<compile_context>
chip_gen: v5e
topology: v5e:2x2
jax: 0.10.0
libtpu: 0.0.40
codegen_flags: <defaults>
</compile_context>

<pallas_src>
import jax
import jax.numpy as jnp
from jax.experimental import pallas as pl
from jax.experimental.pallas import tpu as pltpu

LEAKY_SLOPE = 0.01   # torch.nn.functional.leaky_relu default negative_slope
BN_EPS = 1e-5        # torch.nn.BatchNorm2d default eps
LANE = 128           # TPU lane width


def _leaky_relu(x):
    return jnp.where(x > 0, x, LEAKY_SLOPE * x)


# ----------------------------- Pallas kernel ------------------------------- #
def residual_block_kernel(x_ref, w1_ref, b1_ref, w2_ref, b2_ref, out_ref,
                          pad_ref, col_ref):
    """One batch image per grid step.

    x_ref  : (1, H, W, Cp)   input activations (NHWC, channel-padded), f32
    w*_ref : (9*Cp, Cp)      conv weights with BN scale folded in, MXU dtype
    b*_ref : (1, Cp)         folded conv-bias + BN bias, f32
    out_ref: (1, H, W, Cp)
    pad_ref: (H+2, W+2, Cp)  f32 scratch: zero halo frame + interior
    col_ref: (H*W, 9*Cp)     MXU-dtype scratch: im2col patches
    """
    _, H, W, Cp = x_ref.shape

    # Zero only the halo frame; the interior is fully overwritten before each
    # conv.  Done every grid step (scratch is per-core under megacore).
    zrow = jnp.zeros((1, W + 2, Cp), pad_ref.dtype)
    pad_ref[0:1, :, :] = zrow
    pad_ref[H + 1:H + 2, :, :] = zrow
    zcol = jnp.zeros((H + 2, 1, Cp), pad_ref.dtype)
    pad_ref[:, 0:1, :] = zcol
    pad_ref[:, W + 1:W + 2, :] = zcol

    def conv3x3(w_ref, b_ref):
        # im2col: 9 lane-aligned copies into col_ref, then one MXU matmul with
        # a 9*Cp-deep contraction (bf16 inputs, f32 accumulation).
        for dy in range(3):
            for dx in range(3):
                t = dy * 3 + dx
                col_ref[:, t * Cp:(t + 1) * Cp] = (
                    pad_ref[dy:dy + H, dx:dx + W, :]
                    .reshape(H * W, Cp).astype(col_ref.dtype))
        acc = jnp.dot(col_ref[...], w_ref[...],
                      preferred_element_type=jnp.float32)
        return acc + b_ref[...]                       # (H*W, Cp), f32 epilogue

    # ---- conv1 (+ folded BN1) + leaky_relu ----
    pad_ref[1:H + 1, 1:W + 1, :] = x_ref[0].astype(pad_ref.dtype)
    y = _leaky_relu(conv3x3(w1_ref, b1_ref))

    # ---- conv2 (+ folded BN2) + residual add + leaky_relu ----
    pad_ref[1:H + 1, 1:W + 1, :] = y.reshape(H, W, Cp)
    y = conv3x3(w2_ref, b2_ref).reshape(H, W, Cp) + x_ref[0].astype(jnp.float32)
    out_ref[0] = _leaky_relu(y).astype(out_ref.dtype)


# ------------------------------- JAX glue ---------------------------------- #
def _fold_bn_into_conv(w, cb, g, be, m, v, c_pad, mxu_dtype):
    """Fold conv bias + eval-mode BN into the conv weights & a per-channel bias;
    pad channels to c_pad and reshape weights to im2col layout (9*c_pad, c_pad)."""
    c = w.shape[-1]
    scale = g / jnp.sqrt(v + BN_EPS)                        # (C,)
    w_f = w * scale.reshape(1, 1, 1, c)                     # scale -> out channels
    b_f = be + scale * (cb - m)                             # (C,)
    w_p = jnp.zeros((3, 3, c_pad, c_pad), jnp.float32).at[:, :, :c, :c].set(w_f)
    b_p = jnp.zeros((c_pad,), jnp.float32).at[:c].set(b_f)
    return (w_p.reshape(9 * c_pad, c_pad).astype(mxu_dtype),
            b_p.reshape(1, c_pad))


def residual_block_nhwc(x, w1, cb1, g1, be1, m1, v1, w2, cb2, g2, be2, m2, v2,
                        mxu_dtype=jnp.bfloat16):
    N, H, W, C = x.shape
    Cp = ((C + LANE - 1) // LANE) * LANE                    # lane-dense channels

    w1m, b1m = _fold_bn_into_conv(w1, cb1, g1, be1, m1, v1, Cp, mxu_dtype)
    w2m, b2m = _fold_bn_into_conv(w2, cb2, g2, be2, m2, v2, Cp, mxu_dtype)

    x_p = x if Cp == C else jnp.pad(x, ((0, 0), (0, 0), (0, 0), (0, Cp - C)))

    flops = 2 * (2 * N * H * W * (9 * Cp) * Cp)             # two convs
    bytes_accessed = (2 * N * H * W * Cp * x.dtype.itemsize
                      + 2 * 9 * Cp * Cp * jnp.dtype(mxu_dtype).itemsize
                      + 2 * Cp * 4)

    out = pl.pallas_call(
        residual_block_kernel,
        out_shape=jax.ShapeDtypeStruct((N, H, W, Cp), x.dtype),
        grid_spec=pltpu.PrefetchScalarGridSpec(
            num_scalar_prefetch=0,
            grid=(N,),
            in_specs=[
                pl.BlockSpec((1, H, W, Cp), lambda n: (n, 0, 0, 0)),   # x
                pl.BlockSpec((9 * Cp, Cp), lambda n: (0, 0)),          # w1
                pl.BlockSpec((1, Cp), lambda n: (0, 0)),               # b1
                pl.BlockSpec((9 * Cp, Cp), lambda n: (0, 0)),          # w2
                pl.BlockSpec((1, Cp), lambda n: (0, 0)),               # b2
            ],
            out_specs=pl.BlockSpec((1, H, W, Cp), lambda n: (n, 0, 0, 0)),
            scratch_shapes=[
                pltpu.VMEM((H + 2, W + 2, Cp), jnp.float32),           # padded input
                pltpu.VMEM((H * W, 9 * Cp), mxu_dtype),                # im2col
            ],
        ),
        compiler_params=pltpu.CompilerParams(
            dimension_semantics=("parallel",),   # shard batch across TCs on v7x
            vmem_limit_bytes=32 * 1024 * 1024,
        ),
        cost_estimate=pl.CostEstimate(flops=int(flops), transcendentals=0,
                                      bytes_accessed=int(bytes_accessed)),
    )(x_p, w1m, b1m, w2m, b2m)
    return out if Cp == C else out[..., :C]


def residual_block_nchw(x_nchw, *params):
    """Thin NCHW adapter matching the PyTorch interface (prefer the NHWC entry)."""
    x = jnp.transpose(x_nchw, (0, 2, 3, 1))                 # NCHW -> NHWC
    out = residual_block_nhwc(x, *params)
    return jnp.transpose(out, (0, 3, 1, 2))                 # NHWC -> NCHW


# --------------------------- pure-JAX reference ----------------------------- #
def reference_nchw(x_nchw, w1, cb1, g1, be1, m1, v1, w2, cb2, g2, be2, m2, v2):
    x = jnp.transpose(x_nchw, (0, 2, 3, 1))

    def conv(a, w, b):
        y = jax.lax.conv_general_dilated(
            a, w, window_strides=(1, 1), padding="SAME",
            dimension_numbers=("NHWC", "HWIO", "NHWC"))
        return y + b.reshape(1, 1, 1, -1)

    def bn(a, g, be, m, v):
        return (a - m.reshape(1, 1, 1, -1)) / jnp.sqrt(v.reshape(1, 1, 1, -1) + BN_EPS) \
               * g.reshape(1, 1, 1, -1) + be.reshape(1, 1, 1, -1)

    y = _leaky_relu(bn(conv(x, w1, cb1), g1, be1, m1, v1))
    y = bn(conv(y, w2, cb2), g2, be2, m2, v2) + x
    y = _leaky_relu(y)
    return jnp.transpose(y, (0, 3, 1, 2))


# ---------------------------------- main ------------------------------------ #
if __name__ == "__main__":
    # Small but lane-dense shapes (module default filters=256; 128 keeps it small).
    N, C, H, W = 4, 128, 8, 8
    key = jax.random.PRNGKey(0)
    k = jax.random.split(key, 13)

    x_nchw = jax.random.normal(k[0], (N, C, H, W), jnp.float32)

    fan_in = C * 3 * 3
    bound = 1.0 / (fan_in ** 0.5)      # matches torch Conv2d default init bound
    w1 = jax.random.uniform(k[1], (3, 3, C, C), jnp.float32, -bound, bound)   # HWIO
    cb1 = jax.random.uniform(k[2], (C,), jnp.float32, -bound, bound)
    w2 = jax.random.uniform(k[3], (3, 3, C, C), jnp.float32, -bound, bound)
    cb2 = jax.random.uniform(k[4], (C,), jnp.float32, -bound, bound)

    g1 = jax.random.uniform(k[5], (C,), jnp.float32, 0.5, 1.5)
    be1 = 0.1 * jax.random.normal(k[6], (C,), jnp.float32)
    m1 = 0.1 * jax.random.normal(k[7], (C,), jnp.float32)
    v1 = jax.random.uniform(k[8], (C,), jnp.float32, 0.5, 1.5)
    g2 = jax.random.uniform(k[9], (C,), jnp.float32, 0.5, 1.5)
    be2 = 0.1 * jax.random.normal(k[10], (C,), jnp.float32)
    m2 = 0.1 * jax.random.normal(k[11], (C,), jnp.float32)
    v2 = jax.random.uniform(k[12], (C,), jnp.float32, 0.5, 1.5)

    params = (w1, cb1, g1, be1, m1, v1, w2, cb2, g2, be2, m2, v2)

    run = jax.jit(residual_block_nchw)
    out = jax.block_until_ready(run(x_nchw, *params))

    ref = reference_nchw(x_nchw, *params)
    err = float(jnp.max(jnp.abs(out - ref)))
    assert out.shape == (N, C, H, W)
    # bf16 MXU inputs with f32 accumulation vs. a pure-f32 reference.
    assert err < 5e-2, f"max abs error too large: {err}"
    print("KERNEL_OK")
</pallas_src>

<mosaic_0001>
module attributes {stable_mosaic.version = 11 : i64} {
  func.func @residual_block_kernel(%arg0: i32, %arg1: memref<1x8x8x128xf32, #tpu.memory_space<vmem>>, %arg2: memref<1152x128xbf16, #tpu.memory_space<vmem>>, %arg3: memref<1x128xf32, #tpu.memory_space<vmem>>, %arg4: memref<1152x128xbf16, #tpu.memory_space<vmem>>, %arg5: memref<1x128xf32, #tpu.memory_space<vmem>>, %arg6: memref<1x8x8x128xf32, #tpu.memory_space<vmem>>, %arg7: memref<10x10x128xf32, #tpu.memory_space<vmem>>, %arg8: memref<64x1152xbf16, #tpu.memory_space<vmem>>) attributes {dimension_semantics = [#tpu.dimension_semantics<parallel>], iteration_bounds = array<i64: 4>, scalar_prefetch = 0 : i64, scratch_operands = 2 : i64, tpu.core_type = #tpu.core_type<tc>, window_params = [{transform_indices = @transform_0, window_bounds = array<i64: 1, 8, 8, 128>}, {pipeline_mode = #tpu.pipeline_mode<synchronous>, transform_indices = @transform_1, window_bounds = array<i64: 1152, 128>}, {pipeline_mode = #tpu.pipeline_mode<synchronous>, transform_indices = @transform_2, window_bounds = array<i64: 1, 128>}, {pipeline_mode = #tpu.pipeline_mode<synchronous>, transform_indices = @transform_3, window_bounds = array<i64: 1152, 128>}, {pipeline_mode = #tpu.pipeline_mode<synchronous>, transform_indices = @transform_4, window_bounds = array<i64: 1, 128>}, {transform_indices = @transform_5, window_bounds = array<i64: 1, 8, 8, 128>}]} {
    %cst = arith.constant 0.000000e+00 : f32
    %0 = vector.broadcast %cst : f32 to vector<1x10x128xf32>
    %c0 = arith.constant 0 : index
    %c0_0 = arith.constant 0 : index
    %c0_1 = arith.constant 0 : index
    %1 = vector.load %arg7[%c0, %c0_0, %c0_1] : memref<10x10x128xf32, #tpu.memory_space<vmem>>, vector<1x10x128xf32>
    tpu.vector_store %arg7[%c0, %c0_0, %c0_1], %0 {strides = array<i32>} : memref<10x10x128xf32, #tpu.memory_space<vmem>>, vector<1x10x128xf32>,
    %c9 = arith.constant 9 : index
    %c0_2 = arith.constant 0 : index
    %c0_3 = arith.constant 0 : index
    %2 = vector.load %arg7[%c9, %c0_2, %c0_3] : memref<10x10x128xf32, #tpu.memory_space<vmem>>, vector<1x10x128xf32>
    tpu.vector_store %arg7[%c9, %c0_2, %c0_3], %0 {strides = array<i32>} : memref<10x10x128xf32, #tpu.memory_space<vmem>>, vector<1x10x128xf32>,
    %cst_4 = arith.constant 0.000000e+00 : f32
    %3 = vector.broadcast %cst_4 : f32 to vector<10x1x128xf32>
    %c0_5 = arith.constant 0 : index
    %c0_6 = arith.constant 0 : index
    %c0_7 = arith.constant 0 : index
    %4 = vector.load %arg7[%c0_5, %c0_6, %c0_7] : memref<10x10x128xf32, #tpu.memory_space<vmem>>, vector<10x1x128xf32>
    tpu.vector_store %arg7[%c0_5, %c0_6, %c0_7], %3 {strides = array<i32>} : memref<10x10x128xf32, #tpu.memory_space<vmem>>, vector<10x1x128xf32>,
    %c0_8 = arith.constant 0 : index
    %c9_9 = arith.constant 9 : index
    %c0_10 = arith.constant 0 : index
    %5 = vector.load %arg7[%c0_8, %c9_9, %c0_10] : memref<10x10x128xf32, #tpu.memory_space<vmem>>, vector<10x1x128xf32>
    tpu.vector_store %arg7[%c0_8, %c9_9, %c0_10], %3 {strides = array<i32>} : memref<10x10x128xf32, #tpu.memory_space<vmem>>, vector<10x1x128xf32>,
    %c0_11 = arith.constant 0 : index
    %c0_12 = arith.constant 0 : index
    %c0_13 = arith.constant 0 : index
    %c0_14 = arith.constant 0 : index
    %6 = vector.load %arg1[%c0_11, %c0_12, %c0_13, %c0_14] : memref<1x8x8x128xf32, #tpu.memory_space<vmem>>, vector<1x8x8x128xf32>
    %7 = vector.shape_cast %6 : vector<1x8x8x128xf32> to vector<8x8x128xf32>
    %c1 = arith.constant 1 : index
    %c1_15 = arith.constant 1 : index
    %c0_16 = arith.constant 0 : index
    %8 = vector.load %arg7[%c1, %c1_15, %c0_16] : memref<10x10x128xf32, #tpu.memory_space<vmem>>, vector<8x8x128xf32>
    tpu.vector_store %arg7[%c1, %c1_15, %c0_16], %7 {strides = array<i32>} : memref<10x10x128xf32, #tpu.memory_space<vmem>>, vector<8x8x128xf32>,
    %c0_17 = arith.constant 0 : index
    %c0_18 = arith.constant 0 : index
    %c0_19 = arith.constant 0 : index
    %9 = vector.load %arg7[%c0_17, %c0_18, %c0_19] : memref<10x10x128xf32, #tpu.memory_space<vmem>>, vector<8x8x128xf32>
    %10 = vector.shape_cast %9 : vector<8x8x128xf32> to vector<64x128xf32>
    %11 = arith.truncf %10 : vector<64x128xf32> to vector<64x128xbf16>
    %c0_20 = arith.constant 0 : index
    %c0_21 = arith.constant 0 : index
    %12 = vector.load %arg8[%c0_20, %c0_21] : memref<64x1152xbf16, #tpu.memory_space<vmem>>, vector<64x128xbf16>
    tpu.vector_store %arg8[%c0_20, %c0_21], %11 {strides = array<i32>} : memref<64x1152xbf16, #tpu.memory_space<vmem>>, vector<64x128xbf16>,
    %c0_22 = arith.constant 0 : index
    %c1_23 = arith.constant 1 : index
    %c0_24 = arith.constant 0 : index
    %13 = vector.load %arg7[%c0_22, %c1_23, %c0_24] : memref<10x10x128xf32, #tpu.memory_space<vmem>>, vector<8x8x128xf32>
    %14 = vector.shape_cast %13 : vector<8x8x128xf32> to vector<64x128xf32>
    %15 = arith.truncf %14 : vector<64x128xf32> to vector<64x128xbf16>
    %c0_25 = arith.constant 0 : index
    %c128 = arith.constant 128 : index
    %16 = vector.load %arg8[%c0_25, %c128] : memref<64x1152xbf16, #tpu.memory_space<vmem>>, vector<64x128xbf16>
    tpu.vector_store %arg8[%c0_25, %c128], %15 {strides = array<i32>} : memref<64x1152xbf16, #tpu.memory_space<vmem>>, vector<64x128xbf16>,
    %c0_26 = arith.constant 0 : index
    %c2 = arith.constant 2 : index
    %c0_27 = arith.constant 0 : index
    %17 = vector.load %arg7[%c0_26, %c2, %c0_27] : memref<10x10x128xf32, #tpu.memory_space<vmem>>, vector<8x8x128xf32>
    %18 = vector.shape_cast %17 : vector<8x8x128xf32> to vector<64x128xf32>
    %19 = arith.truncf %18 : vector<64x128xf32> to vector<64x128xbf16>
    %c0_28 = arith.constant 0 : index
    %c256 = arith.constant 256 : index
    %20 = vector.load %arg8[%c0_28, %c256] : memref<64x1152xbf16, #tpu.memory_space<vmem>>, vector<64x128xbf16>
    tpu.vector_store %arg8[%c0_28, %c256], %19 {strides = array<i32>} : memref<64x1152xbf16, #tpu.memory_space<vmem>>, vector<64x128xbf16>,
    %c1_29 = arith.constant 1 : index
    %c0_30 = arith.constant 0 : index
    %c0_31 = arith.constant 0 : index
    %21 = vector.load %arg7[%c1_29, %c0_30, %c0_31] : memref<10x10x128xf32, #tpu.memory_space<vmem>>, vector<8x8x128xf32>
    %22 = vector.shape_cast %21 : vector<8x8x128xf32> to vector<64x128xf32>
    %23 = arith.truncf %22 : vector<64x128xf32> to vector<64x128xbf16>
    %c0_32 = arith.constant 0 : index
    %c384 = arith.constant 384 : index
    %24 = vector.load %arg8[%c0_32, %c384] : memref<64x1152xbf16, #tpu.memory_space<vmem>>, vector<64x128xbf16>
    tpu.vector_store %arg8[%c0_32, %c384], %23 {strides = array<i32>} : memref<64x1152xbf16, #tpu.memory_space<vmem>>, vector<64x128xbf16>,
    %c1_33 = arith.constant 1 : index
    %c1_34 = arith.constant 1 : index
    %c0_35 = arith.constant 0 : index
    %25 = vector.load %arg7[%c1_33, %c1_34, %c0_35] : memref<10x10x128xf32, #tpu.memory_space<vmem>>, vector<8x8x128xf32>
    %26 = vector.shape_cast %25 : vector<8x8x128xf32> to vector<64x128xf32>
    %27 = arith.truncf %26 : vector<64x128xf32> to vector<64x128xbf16>
    %c0_36 = arith.constant 0 : index
    %c512 = arith.constant 512 : index
    %28 = vector.load %arg8[%c0_36, %c512] : memref<64x1152xbf16, #tpu.memory_space<vmem>>, vector<64x128xbf16>
    tpu.vector_store %arg8[%c0_36, %c512], %27 {strides = array<i32>} : memref<64x1152xbf16, #tpu.memory_space<vmem>>, vector<64x128xbf16>,
    %c1_37 = arith.constant 1 : index
    %c2_38 = arith.constant 2 : index
    %c0_39 = arith.constant 0 : index
    %29 = vector.load %arg7[%c1_37, %c2_38, %c0_39] : memref<10x10x128xf32, #tpu.memory_space<vmem>>, vector<8x8x128xf32>
    %30 = vector.shape_cast %29 : vector<8x8x128xf32> to vector<64x128xf32>
    %31 = arith.truncf %30 : vector<64x128xf32> to vector<64x128xbf16>
    %c0_40 = arith.constant 0 : index
    %c640 = arith.constant 640 : index
    %32 = vector.load %arg8[%c0_40, %c640] : memref<64x1152xbf16, #tpu.memory_space<vmem>>, vector<64x128xbf16>
    tpu.vector_store %arg8[%c0_40, %c640], %31 {strides = array<i32>} : memref<64x1152xbf16, #tpu.memory_space<vmem>>, vector<64x128xbf16>,
    %c2_41 = arith.constant 2 : index
    %c0_42 = arith.constant 0 : index
    %c0_43 = arith.constant 0 : index
    %33 = vector.load %arg7[%c2_41, %c0_42, %c0_43] : memref<10x10x128xf32, #tpu.memory_space<vmem>>, vector<8x8x128xf32>
    %34 = vector.shape_cast %33 : vector<8x8x128xf32> to vector<64x128xf32>
    %35 = arith.truncf %34 : vector<64x128xf32> to vector<64x128xbf16>
    %c0_44 = arith.constant 0 : index
    %c768 = arith.constant 768 : index
    %36 = vector.load %arg8[%c0_44, %c768] : memref<64x1152xbf16, #tpu.memory_space<vmem>>, vector<64x128xbf16>
    tpu.vector_store %arg8[%c0_44, %c768], %35 {strides = array<i32>} : memref<64x1152xbf16, #tpu.memory_space<vmem>>, vector<64x128xbf16>,
    %c2_45 = arith.constant 2 : index
    %c1_46 = arith.constant 1 : index
    %c0_47 = arith.constant 0 : index
    %37 = vector.load %arg7[%c2_45, %c1_46, %c0_47] : memref<10x10x128xf32, #tpu.memory_space<vmem>>, vector<8x8x128xf32>
    %38 = vector.shape_cast %37 : vector<8x8x128xf32> to vector<64x128xf32>
    %39 = arith.truncf %38 : vector<64x128xf32> to vector<64x128xbf16>
    %c0_48 = arith.constant 0 : index
    %c896 = arith.constant 896 : index
    %40 = vector.load %arg8[%c0_48, %c896] : memref<64x1152xbf16, #tpu.memory_space<vmem>>, vector<64x128xbf16>
    tpu.vector_store %arg8[%c0_48, %c896], %39 {strides = array<i32>} : memref<64x1152xbf16, #tpu.memory_space<vmem>>, vector<64x128xbf16>,
    %c2_49 = arith.constant 2 : index
    %c2_50 = arith.constant 2 : index
    %c0_51 = arith.constant 0 : index
    %41 = vector.load %arg7[%c2_49, %c2_50, %c0_51] : memref<10x10x128xf32, #tpu.memory_space<vmem>>, vector<8x8x128xf32>
    %42 = vector.shape_cast %41 : vector<8x8x128xf32> to vector<64x128xf32>
    %43 = arith.truncf %42 : vector<64x128xf32> to vector<64x128xbf16>
    %c0_52 = arith.constant 0 : index
    %c1024 = arith.constant 1024 : index
    %44 = vector.load %arg8[%c0_52, %c1024] : memref<64x1152xbf16, #tpu.memory_space<vmem>>, vector<64x128xbf16>
    tpu.vector_store %arg8[%c0_52, %c1024], %43 {strides = array<i32>} : memref<64x1152xbf16, #tpu.memory_space<vmem>>, vector<64x128xbf16>,
    %c0_53 = arith.constant 0 : index
    %c0_54 = arith.constant 0 : index
    %45 = vector.load %arg8[%c0_53, %c0_54] : memref<64x1152xbf16, #tpu.memory_space<vmem>>, vector<64x1152xbf16>
    %c0_55 = arith.constant 0 : index
    %c0_56 = arith.constant 0 : index
    %46 = vector.load %arg2[%c0_55, %c0_56] : memref<1152x128xbf16, #tpu.memory_space<vmem>>, vector<1152x128xbf16>
    %cst_57 = arith.constant dense<0.000000e+00> : vector<64x128xf32>
    %47 = tpu.matmul %45, %46, %cst_57 {dimension_numbers = #tpu.dot_dimension_numbers<[1], [0], [0], [1], [0, 0, 1, 1], [], []>} : vector<64x1152xbf16>, vector<1152x128xbf16>, vector<64x128xf32> -> vector<64x128xf32>
    %c0_58 = arith.constant 0 : index
    %c0_59 = arith.constant 0 : index
    %48 = vector.load %arg3[%c0_58, %c0_59] : memref<1x128xf32, #tpu.memory_space<vmem>>, vector<1x128xf32>
    %49 = vector.broadcast %48 : vector<1x128xf32> to vector<64x128xf32>
    %50 = arith.addf %47, %49 : vector<64x128xf32>
    %cst_60 = arith.constant 0.000000e+00 : f32
    %51 = vector.broadcast %cst_60 : f32 to vector<64x128xf32>
    %52 = arith.cmpf ogt, %50, %51 : vector<64x128xf32>
    %cst_61 = arith.constant 0.00999999977 : f32
    %53 = vector.broadcast %cst_61 : f32 to vector<64x128xf32>
    %54 = arith.mulf %53, %50 : vector<64x128xf32>
    %55 = arith.select %52, %50, %54 : vector<64x128xi1>, vector<64x128xf32>
    %56 = vector.shape_cast %55 : vector<64x128xf32> to vector<8x8x128xf32>
    %c1_62 = arith.constant 1 : index
    %c1_63 = arith.constant 1 : index
    %c0_64 = arith.constant 0 : index
    %57 = vector.load %arg7[%c1_62, %c1_63, %c0_64] : memref<10x10x128xf32, #tpu.memory_space<vmem>>, vector<8x8x128xf32>
    tpu.vector_store %arg7[%c1_62, %c1_63, %c0_64], %56 {strides = array<i32>} : memref<10x10x128xf32, #tpu.memory_space<vmem>>, vector<8x8x128xf32>,
    %c0_65 = arith.constant 0 : index
    %c0_66 = arith.constant 0 : index
    %c0_67 = arith.constant 0 : index
    %58 = vector.load %arg7[%c0_65, %c0_66, %c0_67] : memref<10x10x128xf32, #tpu.memory_space<vmem>>, vector<8x8x128xf32>
    %59 = vector.shape_cast %58 : vector<8x8x128xf32> to vector<64x128xf32>
    %60 = arith.truncf %59 : vector<64x128xf32> to vector<64x128xbf16>
    %c0_68 = arith.constant 0 : index
    %c0_69 = arith.constant 0 : index
    %61 = vector.load %arg8[%c0_68, %c0_69] : memref<64x1152xbf16, #tpu.memory_space<vmem>>, vector<64x128xbf16>
    tpu.vector_store %arg8[%c0_68, %c0_69], %60 {strides = array<i32>} : memref<64x1152xbf16, #tpu.memory_space<vmem>>, vector<64x128xbf16>,
    %c0_70 = arith.constant 0 : index
    %c1_71 = arith.constant 1 : index
    %c0_72 = arith.constant 0 : index
    %62 = vector.load %arg7[%c0_70, %c1_71, %c0_72] : memref<10x10x128xf32, #tpu.memory_space<vmem>>, vector<8x8x128xf32>
    %63 = vector.shape_cast %62 : vector<8x8x128xf32> to vector<64x128xf32>
    %64 = arith.truncf %63 : vector<64x128xf32> to vector<64x128xbf16>
    %c0_73 = arith.constant 0 : index
    %c128_74 = arith.constant 128 : index
    %65 = vector.load %arg8[%c0_73, %c128_74] : memref<64x1152xbf16, #tpu.memory_space<vmem>>, vector<64x128xbf16>
    tpu.vector_store %arg8[%c0_73, %c128_74], %64 {strides = array<i32>} : memref<64x1152xbf16, #tpu.memory_space<vmem>>, vector<64x128xbf16>,
    %c0_75 = arith.constant 0 : index
    %c2_76 = arith.constant 2 : index
    %c0_77 = arith.constant 0 : index
    %66 = vector.load %arg7[%c0_75, %c2_76, %c0_77] : memref<10x10x128xf32, #tpu.memory_space<vmem>>, vector<8x8x128xf32>
    %67 = vector.shape_cast %66 : vector<8x8x128xf32> to vector<64x128xf32>
    %68 = arith.truncf %67 : vector<64x128xf32> to vector<64x128xbf16>
    %c0_78 = arith.constant 0 : index
    %c256_79 = arith.constant 256 : index
    %69 = vector.load %arg8[%c0_78, %c256_79] : memref<64x1152xbf16, #tpu.memory_space<vmem>>, vector<64x128xbf16>
    tpu.vector_store %arg8[%c0_78, %c256_79], %68 {strides = array<i32>} : memref<64x1152xbf16, #tpu.memory_space<vmem>>, vector<64x128xbf16>,
    %c1_80 = arith.constant 1 : index
    %c0_81 = arith.constant 0 : index
    %c0_82 = arith.constant 0 : index
    %70 = vector.load %arg7[%c1_80, %c0_81, %c0_82] : memref<10x10x128xf32, #tpu.memory_space<vmem>>, vector<8x8x128xf32>
    %71 = vector.shape_cast %70 : vector<8x8x128xf32> to vector<64x128xf32>
    %72 = arith.truncf %71 : vector<64x128xf32> to vector<64x128xbf16>
    %c0_83 = arith.constant 0 : index
    %c384_84 = arith.constant 384 : index
    %73 = vector.load %arg8[%c0_83, %c384_84] : memref<64x1152xbf16, #tpu.memory_space<vmem>>, vector<64x128xbf16>
    tpu.vector_store %arg8[%c0_83, %c384_84], %72 {strides = array<i32>} : memref<64x1152xbf16, #tpu.memory_space<vmem>>, vector<64x128xbf16>,
    %c1_85 = arith.constant 1 : index
    %c1_86 = arith.constant 1 : index
    %c0_87 = arith.constant 0 : index
    %74 = vector.load %arg7[%c1_85, %c1_86, %c0_87] : memref<10x10x128xf32, #tpu.memory_space<vmem>>, vector<8x8x128xf32>
    %75 = vector.shape_cast %74 : vector<8x8x128xf32> to vector<64x128xf32>
    %76 = arith.truncf %75 : vector<64x128xf32> to vector<64x128xbf16>
    %c0_88 = arith.constant 0 : index
    %c512_89 = arith.constant 512 : index
    %77 = vector.load %arg8[%c0_88, %c512_89] : memref<64x1152xbf16, #tpu.memory_space<vmem>>, vector<64x128xbf16>
    tpu.vector_store %arg8[%c0_88, %c512_89], %76 {strides = array<i32>} : memref<64x1152xbf16, #tpu.memory_space<vmem>>, vector<64x128xbf16>,
    %c1_90 = arith.constant 1 : index
    %c2_91 = arith.constant 2 : index
    %c0_92 = arith.constant 0 : index
    %78 = vector.load %arg7[%c1_90, %c2_91, %c0_92] : memref<10x10x128xf32, #tpu.memory_space<vmem>>, vector<8x8x128xf32>
    %79 = vector.shape_cast %78 : vector<8x8x128xf32> to vector<64x128xf32>
    %80 = arith.truncf %79 : vector<64x128xf32> to vector<64x128xbf16>
    %c0_93 = arith.constant 0 : index
    %c640_94 = arith.constant 640 : index
    %81 = vector.load %arg8[%c0_93, %c640_94] : memref<64x1152xbf16, #tpu.memory_space<vmem>>, vector<64x128xbf16>
    tpu.vector_store %arg8[%c0_93, %c640_94], %80 {strides = array<i32>} : memref<64x1152xbf16, #tpu.memory_space<vmem>>, vector<64x128xbf16>,
    %c2_95 = arith.constant 2 : index
    %c0_96 = arith.constant 0 : index
    %c0_97 = arith.constant 0 : index
    %82 = vector.load %arg7[%c2_95, %c0_96, %c0_97] : memref<10x10x128xf32, #tpu.memory_space<vmem>>, vector<8x8x128xf32>
    %83 = vector.shape_cast %82 : vector<8x8x128xf32> to vector<64x128xf32>
    %84 = arith.truncf %83 : vector<64x128xf32> to vector<64x128xbf16>
    %c0_98 = arith.constant 0 : index
    %c768_99 = arith.constant 768 : index
    %85 = vector.load %arg8[%c0_98, %c768_99] : memref<64x1152xbf16, #tpu.memory_space<vmem>>, vector<64x128xbf16>
    tpu.vector_store %arg8[%c0_98, %c768_99], %84 {strides = array<i32>} : memref<64x1152xbf16, #tpu.memory_space<vmem>>, vector<64x128xbf16>,
    %c2_100 = arith.constant 2 : index
    %c1_101 = arith.constant 1 : index
    %c0_102 = arith.constant 0 : index
    %86 = vector.load %arg7[%c2_100, %c1_101, %c0_102] : memref<10x10x128xf32, #tpu.memory_space<vmem>>, vector<8x8x128xf32>
    %87 = vector.shape_cast %86 : vector<8x8x128xf32> to vector<64x128xf32>
    %88 = arith.truncf %87 : vector<64x128xf32> to vector<64x128xbf16>
    %c0_103 = arith.constant 0 : index
    %c896_104 = arith.constant 896 : index
    %89 = vector.load %arg8[%c0_103, %c896_104] : memref<64x1152xbf16, #tpu.memory_space<vmem>>, vector<64x128xbf16>
    tpu.vector_store %arg8[%c0_103, %c896_104], %88 {strides = array<i32>} : memref<64x1152xbf16, #tpu.memory_space<vmem>>, vector<64x128xbf16>,
    %c2_105 = arith.constant 2 : index
    %c2_106 = arith.constant 2 : index
    %c0_107 = arith.constant 0 : index
    %90 = vector.load %arg7[%c2_105, %c2_106, %c0_107] : memref<10x10x128xf32, #tpu.memory_space<vmem>>, vector<8x8x128xf32>
    %91 = vector.shape_cast %90 : vector<8x8x128xf32> to vector<64x128xf32>
    %92 = arith.truncf %91 : vector<64x128xf32> to vector<64x128xbf16>
    %c0_108 = arith.constant 0 : index
    %c1024_109 = arith.constant 1024 : index
    %93 = vector.load %arg8[%c0_108, %c1024_109] : memref<64x1152xbf16, #tpu.memory_space<vmem>>, vector<64x128xbf16>
    tpu.vector_store %arg8[%c0_108, %c1024_109], %92 {strides = array<i32>} : memref<64x1152xbf16, #tpu.memory_space<vmem>>, vector<64x128xbf16>,
    %c0_110 = arith.constant 0 : index
    %c0_111 = arith.constant 0 : index
    %94 = vector.load %arg8[%c0_110, %c0_111] : memref<64x1152xbf16, #tpu.memory_space<vmem>>, vector<64x1152xbf16>
    %c0_112 = arith.constant 0 : index
    %c0_113 = arith.constant 0 : index
    %95 = vector.load %arg4[%c0_112, %c0_113] : memref<1152x128xbf16, #tpu.memory_space<vmem>>, vector<1152x128xbf16>
    %cst_114 = arith.constant dense<0.000000e+00> : vector<64x128xf32>
    %96 = tpu.matmul %94, %95, %cst_114 {dimension_numbers = #tpu.dot_dimension_numbers<[1], [0], [0], [1], [0, 0, 1, 1], [], []>} : vector<64x1152xbf16>, vector<1152x128xbf16>, vector<64x128xf32> -> vector<64x128xf32>
    %c0_115 = arith.constant 0 : index
    %c0_116 = arith.constant 0 : index
    %97 = vector.load %arg5[%c0_115, %c0_116] : memref<1x128xf32, #tpu.memory_space<vmem>>, vector<1x128xf32>
    %98 = vector.broadcast %97 : vector<1x128xf32> to vector<64x128xf32>
    %99 = arith.addf %96, %98 : vector<64x128xf32>
    %100 = vector.shape_cast %99 : vector<64x128xf32> to vector<8x8x128xf32>
    %c0_117 = arith.constant 0 : index
    %c0_118 = arith.constant 0 : index
    %c0_119 = arith.constant 0 : index
    %c0_120 = arith.constant 0 : index
    %101 = vector.load %arg1[%c0_117, %c0_118, %c0_119, %c0_120] : memref<1x8x8x128xf32, #tpu.memory_space<vmem>>, vector<1x8x8x128xf32>
    %102 = vector.shape_cast %101 : vector<1x8x8x128xf32> to vector<8x8x128xf32>
    %103 = arith.addf %100, %102 : vector<8x8x128xf32>
    %cst_121 = arith.constant 0.000000e+00 : f32
    %104 = vector.broadcast %cst_121 : f32 to vector<8x8x128xf32>
    %105 = arith.cmpf ogt, %103, %104 : vector<8x8x128xf32>
    %cst_122 = arith.constant 0.00999999977 : f32
    %106 = vector.broadcast %cst_122 : f32 to vector<8x8x128xf32>
    %107 = arith.mulf %106, %103 : vector<8x8x128xf32>
    %108 = arith.select %105, %103, %107 : vector<8x8x128xi1>, vector<8x8x128xf32>
    %c0_123 = arith.constant 0 : index
    %c0_124 = arith.constant 0 : index
    %c0_125 = arith.constant 0 : index
    %c0_126 = arith.constant 0 : index
    %109 = vector.load %arg6[%c0_123, %c0_124, %c0_125, %c0_126] : memref<1x8x8x128xf32, #tpu.memory_space<vmem>>, vector<1x8x8x128xf32>
    %110 = vector.shape_cast %109 : vector<1x8x8x128xf32> to vector<8x8x128xf32>
    %111 = vector.shape_cast %108 : vector<8x8x128xf32> to vector<1x8x8x128xf32>
    tpu.vector_store %arg6[%c0_123, %c0_124, %c0_125, %c0_126], %111 {strides = array<i32>} : memref<1x8x8x128xf32, #tpu.memory_space<vmem>>, vector<1x8x8x128xf32>,
    return
  }
  func.func @transform_0(%arg0: i32) -> (i32, i32, i32, i32) {
    %c0_i32 = arith.constant 0 : i32
    %c0_i32_0 = arith.constant 0 : i32
    %c0_i32_1 = arith.constant 0 : i32
    %c0_i32_2 = arith.constant 0 : i32
    return %arg0, %c0_i32, %c0_i32_0, %c0_i32_1 : i32, i32, i32, i32
  }
  func.func @transform_1(%arg0: i32) -> (i32, i32) {
    %c0_i32 = arith.constant 0 : i32
    %c0_i32_0 = arith.constant 0 : i32
    %c0_i32_1 = arith.constant 0 : i32
    return %c0_i32, %c0_i32_0 : i32, i32
  }
  func.func @transform_2(%arg0: i32) -> (i32, i32) {
    %c0_i32 = arith.constant 0 : i32
    %c0_i32_0 = arith.constant 0 : i32
    %c0_i32_1 = arith.constant 0 : i32
    return %c0_i32, %c0_i32_0 : i32, i32
  }
  func.func @transform_3(%arg0: i32) -> (i32, i32) {
    %c0_i32 = arith.constant 0 : i32
    %c0_i32_0 = arith.constant 0 : i32
    %c0_i32_1 = arith.constant 0 : i32
    return %c0_i32, %c0_i32_0 : i32, i32
  }
  func.func @transform_4(%arg0: i32) -> (i32, i32) {
    %c0_i32 = arith.constant 0 : i32
    %c0_i32_0 = arith.constant 0 : i32
    %c0_i32_1 = arith.constant 0 : i32
    return %c0_i32, %c0_i32_0 : i32, i32
  }
  func.func @transform_5(%arg0: i32) -> (i32, i32, i32, i32) {
    %c0_i32 = arith.constant 0 : i32
    %c0_i32_0 = arith.constant 0 : i32
    %c0_i32_1 = arith.constant 0 : i32
    %c0_i32_2 = arith.constant 0 : i32
    return %arg0, %c0_i32, %c0_i32_0, %c0_i32_1 : i32, i32, i32, i32
  }
}

</mosaic_0001>

<bundles_post_ra>
// kernel: residual_block_nchw.1
= control target key start
LH: loop header
LB: loop body
LE: loop exit
PB: predicated region body
PF: predicated region fallthrough
CT: control target
= control target key end

     0   :  { %10 = vsyncpa [#allocation5], 0  ;;  %s5152_s0 = inlined_call_operand.vmem [shape: f32[4,8,8,128], index: 0, kind: input, shape index: {}]   ;;  %s5153_s1 = inlined_call_operand.vmem [shape: bf16[1152,128], index: 1, kind: input, shape index: {}]   ;;  %s5154_s2 = inlined_call_operand.vmem [shape: f32[1,128], index: 2, kind: input, shape index: {}]   ;;  %s5155_s3 = inlined_call_operand.vmem [shape: bf16[1152,128], index: 3, kind: input, shape index: {}]   ;;  %s5156_s4 = inlined_call_operand.vmem [shape: f32[1,128], index: 4, kind: input, shape index: {}]   ;;  %s5157_s5 = inlined_call_operand.hbm [shape: f32[4,8,8,128], index: 5, kind: output, shape index: {}]  }
   0x1   :  { %12 = vsyncpa [#allocation5 + $0x1], 0  ;;  %s4237_s18 = smov 0   ;;  %s4239_s19 = smov 0  }
   0x2   :  { %s4241_s20 = smov 0   ;;  %s4243_s21 = smov 0  }
   0x3 LB: > { %s4258_s22 = sadd.s32 4294967295, %s4202_s21   ;;  %s2986_s23 = sadd.s32 4294967294, %s4202_s21   ;;  %s4202_s21 = sphi %s4243_s21, %s5163_s21   ;;  %s4198_s20 = sphi %s4241_s20, %s5162_s20   ;;  %s4194_s19 = sphi %s4239_s19, %s5161_s19   ;;  %s4190_s18 = sphi %s4237_s18, %s5160_s18  }
   0x4   : > { %s4262_s24 = sadd.s32 1, %s4202_s21   ;;  %s135_s25 = sadd.s32 1, %s4198_s20 }
   0x5   : > { %s132_s26 = ssub.s32 %s4202_s21, %s4262_s24  ;;  %p145_p0 = scmp.ne.s32.totalorder %s4198_s20, %s4194_s19 }
   0x6   : > { %p133_p1 = scmp.eq.s32.totalorder %s132_s26, 0  ;;  %p146_p2 = scmp.eq.s32.totalorder %s4258_s22, 3 }
   0x7   : > { %p151_p3 = scmp.ne.s32.totalorder %s4194_s19, %s4190_s18  ;;  %p152_p4 = scmp.eq.s32.totalorder %s2986_s23, 3 }
   0x8   : > { %s4273_s27 = scalar_select %p133_p1, %s4198_s20, %s135_s25  }
   0x9   : > { %p4275_p5 = por %p146_p2, %p145_p0  ;;  %p4279_p6 = por %p152_p4, %p151_p3 }
   0xa   : > { %p2989_p7 = scmp.ge.s32.totalorder %s4202_s21, 1  ;;  %p190_p8 = scmp.lt.s32.totalorder %s4202_s21, 5 }
   0xc   : > { %p191_p9 = pnand %p2989_p7, %p190_p8 }
   0xd   : > { %p218_p10 = scmp.lt.s32.totalorder (!%p191_p9), %s4258_s22, 3  ;;  %s215_s16 = sand.u32 (!%p191_p9), 1, %s4194_s19  }
   0xe   : > { %194 = sbr.rel (%p191_p9) target bundleno = 638 (0x27e), region = 40  ;;  %s2990_s17 = sshll.u32 (!%p191_p9), %s215_s16, 6 }
   0xf   : > { %s5075_s23 = scalar_lea.vmem (!%p191_p9), [#allocation4], %s2990_s17  ;;  %s4079_s26 = sshll.u32 (!%p191_p9), %s4258_s22, 6 }
  0x10   : > { %s2920_s7 = scalar_lea.hbm (!%p191_p9), %s5157_s5, %s4079_s26  ;;  %s2921_s8 = sshll.u32 (!%p191_p9), %s5075_s23, 4  ;;  %s2922_s8 = int_to_ptr.vmem [resolvable:$true] %s2921_s8 }
  0x11   : > { %s2923_s9 = sshll.u32 (!%p191_p9), %s2920_s7, 4  ;;  %s2924_s9 = int_to_ptr.hbm [resolvable:$true] %s2923_s9 }
  0x12   : > { %s4154_s10 = sshra.s32 (!%p191_p9), %s2924_s9, 4  ;;  %s4155_s10 = int_to_ptr.hbm [resolvable:$true] %s4154_s10 }
  0x13   : > { %v3906_v0 = vld [vmem:[%s5153_s1 + $0x38] sm:$0xff]  ;;  %v4204_v2 = vmov 0.0   ;;  %v3905_v3 = vld [vmem:[%s5153_s1 + $0x30] sm:$0xff]  ;;  %s219_s13 = scalar_select %p218_p10, %s4258_s22, 3  ;;  %v3904_v5 = vld [vmem:[%s5153_s1 + $0x28] sm:$0xff] }
  0x14   : > { %v3914_v1 = vld [vmem:[%s5153_s1 + $0x78] sm:$0xff]  ;;  %232 = vst [vmem:[#allocation2 + $0x40] sm:$0x1] %v4204_v2  ;;  %4080 = vmatpush.bf16.msra.mxu2 %v3906_v0  ;;  %v3913_v4 = vld [vmem:[%s5153_s1 + $0x70] sm:$0xff]  ;;  %1286 = vmatpush.bf16.msra.mxu0 %v3906_v0  ;;  %v3912_v6 = vld [vmem:[%s5153_s1 + $0x68] sm:$0xff]  ;;  %s2909_s22 = scalar_lea.sflag [#allocation5], %s215_s16  ;;  %p4161_p0 = scmp.lt.s32.totalorder %s4155_s10, %s5157_s5 }
  0x15   : > { %4088 = vmatpush.bf16.msra.mxu3 %v3914_v1  ;;  %233 = vst [vmem:[#allocation2 + $0x50] sm:$0x1] %v4204_v2  ;;  %1315 = vmatpush.bf16.msra.mxu1 %v3914_v1  ;;  %s3862_s14 = sshll.u32 %s219_s13, 6  ;;  %v3903_v9 = vld [vmem:[%s5153_s1 + $0x20] sm:$0xff]  ;;  %v3902_v11 = vld [vmem:[%s5153_s1 + $0x18] sm:$0xff]  ;;  %v3901_v17 = vld [vmem:[%s5153_s1 + $0x10] sm:$0xff] }
  0x16   : > { %223 = vst [vmem:[#allocation2] sm:$0xff] %v4204_v2  ;;  %s4309_s25 = scalar_lea.vmem %s5152_s0, %s3862_s14  ;;  %v3911_v10 = vld [vmem:[%s5153_s1 + $0x60] sm:$0xff]  ;;  %v3910_v12 = vld [vmem:[%s5153_s1 + $0x58] sm:$0xff]  ;;  %v3909_v18 = vld [vmem:[%s5153_s1 + $0x50] sm:$0xff]  ;;  %s4160_s13 = scalar_lea.hbm %s5157_s5, 256 }
  0x17   : > { %224 = vst [vmem:[#allocation2 + $0x8] sm:$0x3] %v4204_v2  ;;  %v251_v7 = vld [vmem:[%s4309_s25 + $0x18] sm:$0xff]  ;;  %v252_v8 = vld [vmem:[%s4309_s25 + $0x20] sm:$0xff]  ;;  %v3900_v20 = vld [vmem:[%s5153_s1 + $0x8] sm:$0xff] }
  0x18   : > { %226 = vst [vmem:[#allocation2 + $0x90] sm:$0xff] %v4204_v2  ;;  %4081 = vmatpush.bf16.msra.mxu2 %v3905_v3  ;;  %1287 = vmatpush.bf16.msra.mxu0 %v3905_v3  ;;  %v4353_v19 = vpack.c.bf16 %v251_v7, %v251_v7  ;;  %v3908_v21 = vld [vmem:[%s5153_s1 + $0x48] sm:$0xff]  ;;  %v4362_v22 = vpack.c.bf16 %v252_v8, %v252_v8  ;;  %v3899_v23 = vld [vmem:[%s5153_s1] sm:$0xff]  ;;  %v3922_v28 = vld [vmem:[%s5153_s1 + $0xb8] sm:$0xff] }
  0x19   : > { %4089 = vmatpush.bf16.msra.mxu3 %v3913_v4  ;;  %227 = vst [vmem:[#allocation2 + $0x98] sm:$0x3] %v4204_v2  ;;  %1316 = vmatpush.bf16.msra.mxu1 %v3913_v4  ;;  %v3907_v24 = vld [vmem:[%s5153_s1 + $0x40] sm:$0xff]  ;;  %v3930_v29 = vld [vmem:[%s5153_s1 + $0xf8] sm:$0xff]  ;;  %v3921_v36 = vld [vmem:[%s5153_s1 + $0xb0] sm:$0xff] }
  0x1a   : > { %260 = vst [vmem:[#allocation2 + $0x41] sm:$0xff] %v251_v7  ;;  %v248_v30 = vld [vmem:[%s4309_s25] sm:$0xff]  ;;  %v3938_v33 = vld [vmem:[%s5153_s1 + $0x138] sm:$0xff]  ;;  %v253_v37 = vld [vmem:[%s4309_s25 + $0x28] sm:$0xff] }
  0x1b   : > { %261 = vst [vmem:[#allocation2 + $0x51] sm:$0xff] %v252_v8  ;;  %v4387_v34 = vpack.c.bf16 %v248_v30, %v248_v30  ;;  %v3946_v35 = vld [vmem:[%s5153_s1 + $0x178] sm:$0xff]  ;;  %v254_v39 = vld [vmem:[%s4309_s25 + $0x30] sm:$0xff]  ;;  %v4398_v40 = vpack.c.bf16 %v253_v37, %v253_v37  ;;  %v3920_v49 = vld [vmem:[%s5153_s1 + $0xa8] sm:$0xff] }
  0x1c   : > { %229 = vst [vmem:[#allocation2 + $0x10] sm:$0x1] %v4204_v2  ;;  %4082 = vmatpush.bf16.msra.mxu2 %v3904_v5  ;;  %1288 = vmatpush.bf16.msra.mxu0 %v3904_v5  ;;  %v3929_v42 = vld [vmem:[%s5153_s1 + $0xf0] sm:$0xff]  ;;  %v4407_v46 = vpack.c.bf16 %v254_v39, %v254_v39  ;;  %v249_v50 = vld [vmem:[%s4309_s25 + $0x8] sm:$0xff]  ;;  %v3919_v57 = vld [vmem:[%s5153_s1 + $0xa0] sm:$0xff] }
  0x1d   : > { %4090 = vmatpush.bf16.msra.mxu3 %v3912_v6  ;;  %230 = vst [vmem:[#allocation2 + $0x20] sm:$0x1] %v4204_v2  ;;  %1317 = vmatpush.bf16.msra.mxu1 %v3912_v6  ;;  %v3937_v43 = vld [vmem:[%s5153_s1 + $0x130] sm:$0xff]  ;;  %v3928_v51 = vld [vmem:[%s5153_s1 + $0xe8] sm:$0xff]  ;;  %v4433_v59 = vpack.c.bf16 %v249_v50, %v249_v50  ;;  %v3927_v61 = vld [vmem:[%s5153_s1 + $0xe0] sm:$0xff] }
  0x1e   : > { %231 = vst [vmem:[#allocation2 + $0x30] sm:$0x1] %v4204_v2  ;;  %v289_v25 = vld [vmem:[#allocation2 + $0x1] sm:$0xff]  ;;  %v3945_v47 = vld [vmem:[%s5153_s1 + $0x170] sm:$0xff]  ;;  %v3918_v6 = vld [vmem:[%s5153_s1 + $0x98] sm:$0xff] }
  0x1f   : > { %234 = vst [vmem:[#allocation2 + $0x60] sm:$0x1] %v4204_v2  ;;  %v297_v31 = vpack.c.bf16 %v289_v25, %v289_v25  ;;  %v3936_v52 = vld [vmem:[%s5153_s1 + $0x128] sm:$0xff]  ;;  %v250_v58 = vld [vmem:[%s4309_s25 + $0x10] sm:$0xff]  ;;  %v3935_v63 = vld [vmem:[%s5153_s1 + $0x120] sm:$0xff] }
  0x20   : > { %235 = vst [vmem:[#allocation2 + $0x70] sm:$0x1] %v4204_v2  ;;  %4083 = vmatpush.bf16.msra.mxu2 %v3903_v9  ;;  %1289 = vmatpush.bf16.msra.mxu0 %v3903_v9  ;;  %v3944_v54 = vld [vmem:[%s5153_s1 + $0x168] sm:$0xff]  ;;  %v3943_v4 = vld [vmem:[%s5153_s1 + $0x160] sm:$0xff]  ;;  %v4452_v7 = vpack.c.bf16 %v250_v58, %v250_v58 }
  0x21   : > { %4091 = vmatpush.bf16.msra.mxu3 %v3911_v10  ;;  %v269_v13 = vld [vmem:[#allocation2 + $0x40] sm:$0xff]  ;;  %236 = vst [vmem:[#allocation2 + $0x80] sm:$0x1] %v4204_v2  ;;  %1318 = vmatpush.bf16.msra.mxu1 %v3911_v10  ;;  %v3926_v10 = vld [vmem:[%s5153_s1 + $0xd8] sm:$0xff] }
  0x22   : > { %v270_v14 = vld [vmem:[#allocation2 + $0x50] sm:$0xff]  ;;  %v4336_v15 = vpack.c.bf16 %v269_v13, %v269_v13  ;;  %239 = vst [vmem:[#allocation2 + $0x19] sm:$0x1] %v4204_v2 }
  0x23   : > { %v4339_v16 = vpack.c.bf16 %v270_v14, %v270_v14  ;;  %240 = vst [vmem:[#allocation2 + $0x29] sm:$0x1] %v4204_v2 }
  0x24   : > { %285 = vst [vmem:[#allocation3 + $0x90] sm:$0xf] %v4336_v15  ;;  %4084 = vmatpush.bf16.msra.mxu2 %v3902_v11  ;;  %1290 = vmatpush.bf16.msra.mxu0 %v3902_v11  ;;  %v3934_v11 = vld [vmem:[%s5153_s1 + $0x118] sm:$0xff] }
  0x25   : > { %4092 = vmatpush.bf16.msra.mxu3 %v3910_v12  ;;  %286 = vst [vmem:[#allocation3 + $0xb4] sm:$0xf] %v4339_v16  ;;  %1319 = vmatpush.bf16.msra.mxu1 %v3910_v12 }
  0x26   : > { %241 = vst [vmem:[#allocation2 + $0x39] sm:$0x1] %v4204_v2 }
  0x27   : > { %242 = vst [vmem:[#allocation2 + $0x49] sm:$0x1] %v4204_v2 }
  0x28   : > { %243 = vst [vmem:[#allocation2 + $0x59] sm:$0x1] %v4204_v2  ;;  %4085 = vmatpush.bf16.msra.mxu2 %v3901_v17  ;;  %1291 = vmatpush.bf16.msra.mxu0 %v3901_v17 }
  0x29   : > { %4093 = vmatpush.bf16.msra.mxu3 %v3909_v18  ;;  %244 = vst [vmem:[#allocation2 + $0x69] sm:$0x1] %v4204_v2  ;;  %1320 = vmatpush.bf16.msra.mxu1 %v3909_v18  ;;  %v3942_v18 = vld [vmem:[%s5153_s1 + $0x158] sm:$0xff] }
  0x2a   : > { %245 = vst [vmem:[#allocation2 + $0x79] sm:$0x1] %v4204_v2 }
  0x2b   : > { %246 = vst [vmem:[#allocation2 + $0x89] sm:$0x1] %v4204_v2  ;;  %v3067_v26 = vld [vmem:[#allocation3 + $0x90] sm:$0xf] }
  0x2c   : > { %309 = vst [vmem:[#allocation3 + $0x94] sm:$0xf] %v4353_v19  ;;  %4086 = vmatpush.bf16.msra.mxu2 %v3900_v20  ;;  %v3885_v27 = vld [vmem:[#allocation3 + $0xb0] sm:$0xf0]  ;;  %1292 = vmatpush.bf16.msra.mxu0 %v3900_v20 }
  0x2d   : > { %4094 = vmatpush.bf16.msra.mxu3 %v3908_v21  ;;  %310 = vst [vmem:[#allocation3 + $0xb8] sm:$0xf] %v4362_v22  ;;  %1321 = vmatpush.bf16.msra.mxu1 %v3908_v21  ;;  %v3068_v32 = vor.u32 %v3885_v27, %v3067_v26 }
  0x2e   : > { %228 = vst [vmem:[#allocation2] sm:$0x1] %v4204_v2 }
  0x2f   : > { %237 = vst [vmem:[#allocation2 + $0x90] sm:$0x1] %v4204_v2 }
  0x30   : > { %238 = vst [vmem:[#allocation2 + $0x9] sm:$0x1] %v4204_v2  ;;  %4087 = vmatpush.bf16.msra.mxu2 %v3899_v23  ;;  %1293 = vmatpush.bf16.msra.mxu0 %v3899_v23  ;;  %v3917_v23 = vld [vmem:[%s5153_s1 + $0x90] sm:$0xff] }
  0x31   : > { %4095 = vmatpush.bf16.msra.mxu3 %v3907_v24  ;;  %247 = vst [vmem:[#allocation2 + $0x99] sm:$0x1] %v4204_v2  ;;  %1322 = vmatpush.bf16.msra.mxu1 %v3907_v24 }
  0x32   : > { %257 = vst [vmem:[#allocation2 + $0x11] sm:$0xff] %v248_v30 }
  0x33   : > { %v3881_v38 = vld [vmem:[#allocation3 + $0x94] sm:$0xf]  ;;  %305 = vst [vmem:[#allocation3 + $0x4] sm:$0xf] %v297_v31  ;;  %1304 = vmatmul.bf16.vlgmr.msra.gmra.mxu2 %v3068_v32 }
  0x34   : > { %1344 = vmatpush.bf16.msrb.mxu2 %v3922_v28  ;;  %v3069_v41 = vld [vmem:[#allocation3 + $0xb4] sm:$0xf0]  ;;  %1402 = vmatpush.bf16.msrb.mxu0 %v3938_v33  ;;  %306 = vst [vmem:[#allocation3 + $0x28] sm:$0xf] %v4387_v34  ;;  %v3925_v28 = vld [vmem:[%s5153_s1 + $0xd0] sm:$0xff]  ;;  %v3916_v33 = vld [vmem:[%s5153_s1 + $0x88] sm:$0xff] }
  0x35   : > { %1373 = vmatpush.bf16.msrb.mxu3 %v3930_v29  ;;  %v3072_v44 = vor.u32 %v3881_v38, %v3069_v41  ;;  %v265_v45 = vld [vmem:[#allocation2] sm:$0xff]  ;;  %1431 = vmatpush.bf16.msrb.mxu1 %v3946_v35  ;;  %262 = vst [vmem:[#allocation2 + $0x61] sm:$0xff] %v253_v37  ;;  %v3933_v29 = vld [vmem:[%s5153_s1 + $0x110] sm:$0xff]  ;;  %v3924_v37 = vld [vmem:[%s5153_s1 + $0xc8] sm:$0xff] }
  0x36   : > { %v273_v48 = vpack.c.bf16 %v265_v45, %v265_v45  ;;  %263 = vst [vmem:[#allocation2 + $0x71] sm:$0xff] %v254_v39  ;;  %v3932_v39 = vld [vmem:[%s5153_s1 + $0x108] sm:$0xff] }
  0x37   : > { %1333 = vmatmul.bf16.vlgmr.msra.gmra.mxu3 %v3072_v44  ;;  %311 = vst [vmem:[#allocation3 + $0xdc] sm:$0xf] %v4398_v40  ;;  %v313_v1 = vld [vmem:[#allocation2 + $0x2] sm:$0xff] }
  0x38   : > { %1345 = vmatpush.bf16.msrb.mxu2 %v3921_v36  ;;  %281 = vst [vmem:[#allocation3] sm:$0xf] %v273_v48  ;;  %1403 = vmatpush.bf16.msrb.mxu0 %v3937_v43  ;;  %v321_v12 = vpack.c.bf16 %v313_v1, %v313_v1  ;;  %v3940_v44 = vld [vmem:[%s5153_s1 + $0x148] sm:$0xff] }
  0x39   : > { %1374 = vmatpush.bf16.msrb.mxu3 %v3929_v42  ;;  %v266_v53 = vld [vmem:[#allocation2 + $0x10] sm:$0xff]  ;;  %312 = vst [vmem:[#allocation3 + $0x100] sm:$0xf] %v4407_v46  ;;  %1432 = vmatpush.bf16.msrb.mxu1 %v3945_v47  ;;  %v3952_v1 = vld [vmem:[%s5153_s1 + $0x1a8] sm:$0xff] }
  0x3a   : > { %v4427_v55 = vpack.c.bf16 %v266_v53, %v266_v53  ;;  %v3863_v56 = vld [vmem:[#allocation3 + $0x4] sm:$0xf]  ;;  %258 = vst [vmem:[#allocation2 + $0x21] sm:$0xff] %v249_v50  ;;  %v314_v8 = vld [vmem:[#allocation2 + $0x12] sm:$0xff] }
  0x3b   : > { %v2997_v60 = vld [vmem:[#allocation3 + $0x24] sm:$0xf0]  ;;  %1619 = vst [vmem:[#allocation3 + $0x4] sm:$0xf] %v297_v31  ;;  %v322_v20 = vpack.c.bf16 %v314_v8, %v314_v8  ;;  %v3941_v31 = vld [vmem:[%s5153_s1 + $0x150] sm:$0xff]  ;;  %v3962_v53 = vld [vmem:[%s5153_s1 + $0x1f8] sm:$0xff] }
  0x3c   : > { %1346 = vmatpush.bf16.msrb.mxu2 %v3920_v49  ;;  %282 = vst [vmem:[#allocation3 + $0x24] sm:$0xf] %v4427_v55  ;;  %v3000_v62 = vor.u32 %v3863_v56, %v2997_v60  ;;  %1404 = vmatpush.bf16.msrb.mxu0 %v3936_v52  ;;  %v271_v0 = vld [vmem:[#allocation2 + $0x60] sm:$0xff]  ;;  %v3970_v56 = vld [vmem:[%s5153_s1 + $0x238] sm:$0xff]  ;;  %v3969_v8 = vld [vmem:[%s5153_s1 + $0x230] sm:$0xff] }
  0x3d   : > { %1375 = vmatpush.bf16.msrb.mxu3 %v3928_v51  ;;  %v272_v2 = vld [vmem:[#allocation2 + $0x70] sm:$0xff]  ;;  %v4442_v3 = vpack.c.bf16 %v271_v0, %v271_v0  ;;  %259 = vst [vmem:[#allocation2 + $0x31] sm:$0xff] %v250_v58  ;;  %1433 = vmatpush.bf16.msrb.mxu1 %v3944_v54  ;;  %v3923_v51 = vld [vmem:[%s5153_s1 + $0xc0] sm:$0xff] }
  0x3e   : > { %1323 = vmatmul.bf16.vlgmr.msra.gmra.mxu1 %v3000_v62  ;;  %v4447_v5 = vpack.c.bf16 %v272_v2, %v272_v2  ;;  %307 = vst [vmem:[#allocation3 + $0x4c] sm:$0xf] %v4433_v59  ;;  %v3890_v13 = vld [vmem:[#allocation3 + $0xdc] sm:$0xf]  ;;  %v3931_v52 = vld [vmem:[%s5153_s1 + $0x100] sm:$0xff]  ;;  %v3961_v62 = vld [vmem:[%s5153_s1 + $0x1f0] sm:$0xff] }
  0x3f   : > { %v2995_v9 = vld [vmem:[#allocation3] sm:$0xf]  ;;  %287 = vst [vmem:[#allocation3 + $0xd8] sm:$0xf] %v4442_v3 }
  0x40   : > { %1347 = vmatpush.bf16.msrb.mxu2 %v3919_v57  ;;  %1595 = vst [vmem:[#allocation3] sm:$0xf] %v273_v48  ;;  %1405 = vmatpush.bf16.msrb.mxu0 %v3935_v63  ;;  %v3105_v14 = vld [vmem:[#allocation3 + $0xfc] sm:$0xf0] }
  0x41   : > { %1376 = vmatpush.bf16.msrb.mxu3 %v3927_v61  ;;  %288 = vst [vmem:[#allocation3 + $0xfc] sm:$0xf] %v4447_v5  ;;  %v267_v17 = vld [vmem:[#allocation2 + $0x20] sm:$0xff]  ;;  %1434 = vmatpush.bf16.msrb.mxu1 %v3943_v4  ;;  %v3108_v25 = vor.u32 %v3890_v13, %v3105_v14 }
  0x42   : > { %v4466_v21 = vpack.c.bf16 %v267_v17, %v267_v17  ;;  %308 = vst [vmem:[#allocation3 + $0x70] sm:$0xf] %v4452_v7  ;;  %v386_v35 = vld [vmem:[#allocation2 + $0x22] sm:$0xff] }
  0x43   : > { %v3867_v24 = vld [vmem:[#allocation3 + $0x20] sm:$0xf0]  ;;  %329 = vst [vmem:[#allocation3 + $0x8] sm:$0xf] %v321_v12  ;;  %v4500_v45 = vpack.c.bf16 %v386_v35, %v386_v35 }
  0x44   : > { %1348 = vmatpush.bf16.msrb.mxu2 %v3918_v6  ;;  %v2996_v26 = vor.u32 %v3867_v24, %v2995_v9  ;;  %v268_v27 = vld [vmem:[#allocation2 + $0x30] sm:$0xff]  ;;  %283 = vst [vmem:[#allocation3 + $0x48] sm:$0xf] %v4466_v21  ;;  %1406 = vmatpush.bf16.msrb.mxu0 %v3934_v11  ;;  %v3915_v48 = vld [vmem:[%s5153_s1 + $0x80] sm:$0xff]  ;;  %v3968_v11 = vld [vmem:[%s5153_s1 + $0x228] sm:$0xff] }
  0x45   : > { %1377 = vmatpush.bf16.msrb.mxu3 %v3926_v10  ;;  %v4479_v30 = vpack.c.bf16 %v268_v27, %v268_v27  ;;  %1435 = vmatpush.bf16.msrb.mxu1 %v3942_v18  ;;  %330 = vst [vmem:[#allocation3 + $0x2c] sm:$0xf] %v322_v20  ;;  %v3872_v36 = vld [vmem:[#allocation3 + $0x4c] sm:$0xf]  ;;  %v316_v41 = vld [vmem:[#allocation2 + $0x32] sm:$0xff]  ;;  %v3939_v54 = vld [vmem:[%s5153_s1 + $0x140] sm:$0xff] }
  0x46   : > { %1294 = vmatmul.bf16.vlgmr.msra.gmra.mxu0 %v2996_v26  ;;  %v3103_v32 = vld [vmem:[#allocation3 + $0xd8] sm:$0xf]  ;;  %353 = vst [vmem:[#allocation3 + $0xc] sm:$0xf] %v4427_v55  ;;  %v4511_v50 = vpack.c.bf16 %v316_v41, %v316_v41  ;;  %v3953_v55 = vld [vmem:[%s5153_s1 + $0x1b0] sm:$0xff]  ;;  %v388_v2 = vld [vmem:[#allocation2 + $0x42] sm:$0xff] }
  0x47   : > { %1338 = vmatmul.bf16.gmra.mxu3 %v3108_v25  ;;  %284 = vst [vmem:[#allocation3 + $0x6c] sm:$0xf] %v4479_v30  ;;  %v4544_v6 = vpack.c.bf16 %v388_v2, %v388_v2  ;;  %v3959_v13 = vld [vmem:[%s5153_s1 + $0x1e0] sm:$0xff]  ;;  %v3950_v18 = vld [vmem:[%s5153_s1 + $0x198] sm:$0xff] }
  0x48   : > { %1349 = vmatpush.bf16.msrb.mxu2 %v3917_v23  ;;  %v3894_v38 = vld [vmem:[#allocation3 + $0xf8] sm:$0xf0]  ;;  %1407 = vmatpush.bf16.msrb.mxu0 %v3933_v29  ;;  %354 = vst [vmem:[#allocation3 + $0x30] sm:$0xf] %v4466_v21 }
  0x49   : > { %1378 = vmatpush.bf16.msrb.mxu3 %v3925_v28  ;;  %v3104_v42 = vor.u32 %v3894_v38, %v3103_v32  ;;  %v3033_v43 = vld [vmem:[#allocation3 + $0x6c] sm:$0xf0]  ;;  %1436 = vmatpush.bf16.msrb.mxu1 %v3941_v31  ;;  %377 = vst [vmem:[#allocation3 + $0x10] sm:$0xf] %v4387_v34  ;;  %v3954_v34 = vld [vmem:[%s5153_s1 + $0x1b8] sm:$0xff]  ;;  %v390_v28 = vld [vmem:[#allocation2 + $0x62] sm:$0xff] }
  0x4a   : > { %v3036_v47 = vor.u32 %v3872_v36, %v3033_v43  ;;  %v4505_v49 = vld [vmem:[#allocation3 + $0x8] sm:$0xf]  ;;  %378 = vst [vmem:[#allocation3 + $0x34] sm:$0xf] %v4433_v59  ;;  %v255_v23 = vld [vmem:[%s4309_s25 + $0x38] sm:$0xff]  ;;  %v398_v32 = vpack.c.bf16 %v390_v28, %v390_v28  ;;  %v3957_v36 = vld [vmem:[%s5153_s1 + $0x1d0] sm:$0xff] }
  0x4b   : > { %1309 = vmatmul.bf16.gmra.mxu2 %v3104_v42  ;;  %1643 = vst [vmem:[#allocation3 + $0x8] sm:$0xf] %v321_v12  ;;  %v3031_v57 = vld [vmem:[#allocation3 + $0x48] sm:$0xf]  ;;  %v318_v12 = vld [vmem:[#allocation2 + $0x52] sm:$0xff] }
  0x4c   : > { %1350 = vmatpush.bf16.msrb.mxu2 %v3916_v33  ;;  %1408 = vmatpush.bf16.msrb.mxu0 %v3932_v39  ;;  %401 = vst [vmem:[#allocation3 + $0x14] sm:$0xf] %v322_v20  ;;  %v3868_v4 = vld [vmem:[#allocation3 + $0x28] sm:$0xf0]  ;;  %v326_v14 = vpack.c.bf16 %v318_v12, %v318_v12  ;;  %v320_v38 = vld [vmem:[#allocation2 + $0x72] sm:$0xff] }
  0x4d   : > { %1379 = vmatpush.bf16.msrb.mxu3 %v3924_v37  ;;  %1437 = vmatpush.bf16.msrb.mxu1 %v3940_v44  ;;  %402 = vst [vmem:[#allocation3 + $0x38] sm:$0xf] %v4500_v45  ;;  %v3864_v60 = vld [vmem:[#allocation3 + $0xc] sm:$0xf]  ;;  %v3966_v37 = vld [vmem:[%s5153_s1 + $0x218] sm:$0xff]  ;;  %v328_v41 = vpack.c.bf16 %v320_v38, %v320_v38  ;;  %v376_v44 = vpack.c.bf16 %v255_v23, %v255_v23 }
  0x4e   : > { %1328 = vmatmul.bf16.gmra.mxu1 %v3036_v47  ;;  %331 = vst [vmem:[#allocation3 + $0x50] sm:$0xf] %v4500_v45  ;;  %v3876_v58 = vld [vmem:[#allocation3 + $0x68] sm:$0xf0] }
  0x4f   : > { %332 = vst [vmem:[#allocation3 + $0x74] sm:$0xf] %v4511_v50  ;;  %v3005_v61 = vld [vmem:[#allocation3 + $0x2c] sm:$0xf0]  ;;  %v3032_v63 = vor.u32 %v3876_v58, %v3031_v57  ;;  %v3955_v58 = vld [vmem:[%s5153_s1 + $0x1c0] sm:$0xff] }
  0x50   : > { %1351 = vmatpush.bf16.msrb.mxu2 %v3915_v48  ;;  %1409 = vmatpush.bf16.msrb.mxu0 %v3931_v52  ;;  %355 = vst [vmem:[#allocation3 + $0x54] sm:$0xf] %v4479_v30  ;;  %v3008_v0 = vor.u32 %v3864_v60, %v3005_v61  ;;  %v3011_v20 = vld [vmem:[#allocation3 + $0x10] sm:$0xf]  ;;  %v3964_v60 = vld [vmem:[%s5153_s1 + $0x208] sm:$0xff] }
  0x51   : > { %1380 = vmatpush.bf16.msrb.mxu3 %v3923_v51  ;;  %1438 = vmatpush.bf16.msrb.mxu1 %v3939_v54  ;;  %356 = vst [vmem:[#allocation3 + $0x78] sm:$0xf] %v4336_v15  ;;  %v3960_v15 = vld [vmem:[%s5153_s1 + $0x1e8] sm:$0xff] }
  0x52   : > { %379 = vst [vmem:[#allocation3 + $0x58] sm:$0xf] %v4452_v7 }
  0x53   : > { %380 = vst [vmem:[#allocation3 + $0x7c] sm:$0xf] %v4353_v19  ;;  %v3004_v19 = vor.u32 %v3868_v4, %v4505_v49  ;;  %v3865_v9 = vld [vmem:[#allocation3 + $0x14] sm:$0xf] }
  0x54   : > { %1460 = vmatpush.bf16.msra.mxu2 %v3954_v34  ;;  %1518 = vmatpush.bf16.msra.mxu0 %v3970_v56  ;;  %403 = vst [vmem:[#allocation3 + $0x5c] sm:$0xf] %v4511_v50  ;;  %v3013_v10 = vld [vmem:[#allocation3 + $0x34] sm:$0xf0] }
  0x55   : > { %1489 = vmatpush.bf16.msra.mxu3 %v3962_v53  ;;  %357 = vst [vmem:[#allocation3 + $0x9c] sm:$0xf] %v4339_v16  ;;  %v3951_v16 = vld [vmem:[%s5153_s1 + $0x1a0] sm:$0xff]  ;;  %v3016_v17 = vor.u32 %v3865_v9, %v3013_v10  ;;  %v3039_v29 = vld [vmem:[#allocation3 + $0x50] sm:$0xf] }
  0x56   : > { %1299 = vmatmul.bf16.gmra.mxu0 %v3032_v63  ;;  %404 = vst [vmem:[#allocation3 + $0x80] sm:$0xf] %v4544_v6  ;;  %v3877_v31 = vld [vmem:[#allocation3 + $0x70] sm:$0xf0]  ;;  %v412_v9 = vld [vmem:[#allocation2 + $0x40] sm:$0xff] }
  0x57   : > { %1381 = vmatmul.bf16.vlgmr.msrb.gmra.mxu3 %v3008_v0  ;;  %333 = vst [vmem:[#allocation3 + $0x98] sm:$0xf] %v4544_v6  ;;  %v3873_v24 = vld [vmem:[#allocation3 + $0x54] sm:$0xf]  ;;  %v420_v12 = vpack.c.bf16 %v412_v9, %v412_v9 }
  0x58   : > { %1461 = vmatpush.bf16.msra.mxu2 %v3953_v55  ;;  %1519 = vmatpush.bf16.msra.mxu0 %v3969_v8  ;;  %358 = vst [vmem:[#allocation3 + $0xc0] sm:$0xf] %v4442_v3  ;;  %v3041_v25 = vld [vmem:[#allocation3 + $0x74] sm:$0xf0]  ;;  %v413_v10 = vld [vmem:[#allocation2 + $0x50] sm:$0xff] }
  0x59   : > { %1490 = vmatpush.bf16.msra.mxu3 %v3961_v62  ;;  %381 = vst [vmem:[#allocation3 + $0xa0] sm:$0xf] %v4362_v22  ;;  %v3869_v22 = vld [vmem:[#allocation3 + $0x30] sm:$0xf0]  ;;  %v3044_v27 = vor.u32 %v3873_v24, %v3041_v25  ;;  %v3047_v47 = vld [vmem:[#allocation3 + $0x58] sm:$0xf] }
  0x5a   : > { %382 = vst [vmem:[#allocation3 + $0xc4] sm:$0xf] %v4398_v40  ;;  %v3012_v26 = vor.u32 %v3869_v22, %v3011_v20  ;;  %v3878_v48 = vld [vmem:[#allocation3 + $0x78] sm:$0xf0]  ;;  %v3963_v62 = vld [vmem:[%s5153_s1 + $0x200] sm:$0xff] }
  0x5b   : > { %1352 = vmatmul.bf16.vlgmr.msrb.gmra.mxu2 %v3004_v19  ;;  %334 = vst [vmem:[#allocation3 + $0xbc] sm:$0xf] %v326_v14  ;;  %v3874_v33 = vld [vmem:[#allocation3 + $0x5c] sm:$0xf] }
  0x5c   : > { %1462 = vmatpush.bf16.msra.mxu2 %v3952_v1  ;;  %1520 = vmatpush.bf16.msra.mxu0 %v3968_v11  ;;  %405 = vst [vmem:[#allocation3 + $0xa4] sm:$0xf] %v326_v14  ;;  %v3882_v49 = vld [vmem:[#allocation3 + $0x9c] sm:$0xf] }
  0x5d   : > { %1491 = vmatpush.bf16.msra.mxu3 %v3960_v15  ;;  %359 = vst [vmem:[#allocation3 + $0xe4] sm:$0xf] %v4447_v5  ;;  %v3049_v35 = vld [vmem:[#allocation3 + $0x7c] sm:$0xf0] }
  0x5e   : > { %1439 = vmatmul.bf16.vlgmr.msrb.gmra.mxu1 %v3016_v17  ;;  %383 = vst [vmem:[#allocation3 + $0xe8] sm:$0xf] %v4407_v46  ;;  %v3052_v43 = vor.u32 %v3874_v33, %v3049_v35  ;;  %v3075_v52 = vld [vmem:[#allocation3 + $0x98] sm:$0xf] }
  0x5f   : > { %426 = vst [vmem:[#allocation3 + $0x18] sm:$0xf] %v4466_v21  ;;  %v3958_v21 = vld [vmem:[%s5153_s1 + $0x1d8] sm:$0xff]  ;;  %v3077_v34 = vld [vmem:[#allocation3 + $0xbc] sm:$0xf0] }
  0x60   : > { %1463 = vmatpush.bf16.msra.mxu2 %v3951_v16  ;;  %264 = vst [vmem:[#allocation2 + $0x81] sm:$0xff] %v255_v23  ;;  %v3083_v63 = vld [vmem:[#allocation3 + $0xa0] sm:$0xf]  ;;  %v437_v17 = vld [vmem:[#allocation2 + $0x51] sm:$0xff] }
  0x61   : > { %1492 = vmatpush.bf16.msra.mxu3 %v3959_v13  ;;  %427 = vst [vmem:[#allocation3 + $0x3c] sm:$0xf] %v4479_v30  ;;  %v3040_v30 = vor.u32 %v3877_v31, %v3039_v29  ;;  %v3887_v0 = vld [vmem:[#allocation3 + $0xc0] sm:$0xf0]  ;;  %v421_v13 = vpack.c.bf16 %v413_v10, %v413_v10  ;;  %v445_v20 = vpack.c.bf16 %v437_v17, %v437_v17 }
  0x62   : > { %450 = vst [vmem:[#allocation3 + $0x1c] sm:$0xf] %v4433_v59  ;;  %v3967_v59 = vld [vmem:[%s5153_s1 + $0x220] sm:$0xff]  ;;  %v3886_v53 = vld [vmem:[#allocation3 + $0xb8] sm:$0xf0]  ;;  %v3084_v4 = vor.u32 %v3887_v0, %v3083_v63 }
  0x63   : > { %451 = vst [vmem:[#allocation3 + $0x40] sm:$0xf] %v4452_v7  ;;  %v3949_v7 = vld [vmem:[%s5153_s1 + $0x190] sm:$0xff]  ;;  %1521 = vmatpush.bf16.msra.mxu0 %v3967_v59  ;;  %v3076_v55 = vor.u32 %v3886_v53, %v3075_v52  ;;  %v3883_v56 = vld [vmem:[#allocation3 + $0xa4] sm:$0xf] }
  0x64   : > { %1464 = vmatpush.bf16.msra.mxu2 %v3950_v18  ;;  %474 = vst [vmem:[#allocation3 + $0x20] sm:$0xf] %v4500_v45  ;;  %v3948_v45 = vld [vmem:[%s5153_s1 + $0x188] sm:$0xff]  ;;  %v3891_v1 = vld [vmem:[#allocation3 + $0xe4] sm:$0xf] }
  0x65   : > { %475 = vst [vmem:[#allocation3 + $0x44] sm:$0xf] %v4511_v50  ;;  %1493 = vmatpush.bf16.msra.mxu3 %v3958_v21  ;;  %v3080_v50 = vor.u32 %v3882_v49, %v3077_v34  ;;  %v3119_v23 = vld [vmem:[#allocation3 + $0xe8] sm:$0xf]  ;;  %v4625_v52 = vld [vmem:[%s5154_s2] ss:$0 sm:$0xff] }
  0x66   : > { %1410 = vmatmul.bf16.vlgmr.msrb.gmra.mxu0 %v3012_v26  ;;  %406 = vst [vmem:[#allocation3 + $0xc8] sm:$0xf] %v398_v32  ;;  %v3019_v29 = vld [vmem:[#allocation3 + $0x18] sm:$0xf] }
  0x67   : > { %1386 = vmatmul.bf16.gmra.mxu3 %v3044_v27  ;;  %335 = vst [vmem:[#allocation3 + $0xe0] sm:$0xf] %v398_v32  ;;  %v344_v39 = vld [vmem:[#allocation2 + $0x80] sm:$0xff]  ;;  %1522 = vmatpush.bf16.msra.mxu0 %v3966_v37 }
  0x68   : > { %476 = vst [vmem:[#allocation3 + $0x68] sm:$0xf] %v4544_v6  ;;  %1465 = vmatpush.bf16.msra.mxu2 %v3949_v7  ;;  %v352_v42 = vpack.c.bf16 %v344_v39, %v344_v39  ;;  %v392_v51 = vld [vmem:[#allocation2 + $0x82] sm:$0xff]  ;;  %v3870_v31 = vld [vmem:[#allocation3 + $0x38] sm:$0xf0]  ;;  %v417_v39 = vld [vmem:[#allocation2 + $0x90] sm:$0xff] }
  0x69   : > { %477 = vst [vmem:[#allocation3 + $0x8c] sm:$0xf] %v326_v14  ;;  %1494 = vmatpush.bf16.msra.mxu3 %v3957_v36  ;;  %v400_v54 = vpack.c.bf16 %v392_v51, %v392_v51  ;;  %v436_v14 = vld [vmem:[#allocation2 + $0x41] sm:$0xff]  ;;  %v3866_v25 = vld [vmem:[#allocation3 + $0x1c] sm:$0xf] }
  0x6a   : > { %430 = vst [vmem:[#allocation3 + $0xa8] sm:$0xf] %v4442_v3  ;;  %v3048_v3 = vor.u32 %v3878_v48, %v3047_v47  ;;  %v444_v18 = vpack.c.bf16 %v436_v14, %v436_v14  ;;  %v3021_v26 = vld [vmem:[#allocation3 + $0x3c] sm:$0xf0] }
  0x6b   : > { %1357 = vmatmul.bf16.gmra.mxu2 %v3040_v30  ;;  %336 = vst [vmem:[#allocation3 + $0x104] sm:$0xf] %v328_v41  ;;  %v3024_v28 = vor.u32 %v3866_v25, %v3021_v26  ;;  %v3027_v33 = vld [vmem:[#allocation3 + $0x20] sm:$0xf]  ;;  %v4014_v25 = vld [vmem:[%s5155_s3 + $0x38] sm:$0xff] }
  0x6c   : > { %360 = vst [vmem:[#allocation3 + $0x108] sm:$0xf] %v352_v42  ;;  %1466 = vmatpush.bf16.msra.mxu2 %v3948_v45  ;;  %v3871_v21 = vld [vmem:[#allocation3 + $0x40] sm:$0xf0]  ;;  %2599 = vmatpush.bf16.msra.mxu1 %v4014_v25 }
  0x6d   : > { %384 = vst [vmem:[#allocation3 + $0x10c] sm:$0xf] %v376_v44  ;;  %v3085_v57 = vld [vmem:[#allocation3 + $0xc4] sm:$0xf0]  ;;  %v3028_v30 = vor.u32 %v3871_v21, %v3027_v33 }
  0x6e   : > { %1444 = vmatmul.bf16.gmra.mxu1 %v3052_v43  ;;  %407 = vst [vmem:[#allocation3 + $0xec] sm:$0xf] %v328_v41  ;;  %v3088_v61 = vor.u32 %v3883_v56, %v3085_v57  ;;  %v3111_v15 = vld [vmem:[#allocation3 + $0xe0] sm:$0xf] }
  0x6f   : > { %431 = vst [vmem:[#allocation3 + $0xcc] sm:$0xf] %v4447_v5  ;;  %v3956_v5 = vld [vmem:[%s5153_s1 + $0x1c8] sm:$0xff] }
  0x70   : > { %454 = vst [vmem:[#allocation3 + $0xac] sm:$0xf] %v4398_v40  ;;  %v3965_v40 = vld [vmem:[%s5153_s1 + $0x210] sm:$0xff]  ;;  %1495 = vmatpush.bf16.msra.mxu3 %v3956_v5  ;;  %v3063_v47 = vld [vmem:[#allocation3 + $0x68] sm:$0xf] }
  0x71   : > { %455 = vst [vmem:[#allocation3 + $0xd0] sm:$0xf] %v4407_v46  ;;  %v3947_v46 = vld [vmem:[%s5153_s1 + $0x180] sm:$0xff]  ;;  %1523 = vmatpush.bf16.msra.mxu0 %v3965_v40  ;;  %v3880_v48 = vld [vmem:[#allocation3 + $0x88] sm:$0xf0] }
  0x72   : > { %478 = vst [vmem:[#allocation3 + $0xb0] sm:$0xf] %v398_v32  ;;  %1467 = vmatpush.bf16.msra.mxu2 %v3947_v46  ;;  %v3895_v8 = vld [vmem:[#allocation3 + $0x100] sm:$0xf0]  ;;  %v3020_v32 = vor.u32 %v3870_v31, %v3019_v29  ;;  %v3091_v5 = vld [vmem:[#allocation3 + $0xa8] sm:$0xf] }
  0x73   : > { %479 = vst [vmem:[#allocation3 + $0xd4] sm:$0xf] %v328_v41  ;;  %v3113_v2 = vld [vmem:[#allocation3 + $0x104] sm:$0xf0]  ;;  %v3112_v16 = vor.u32 %v3895_v8, %v3111_v15  ;;  %v441_v41 = vld [vmem:[#allocation2 + $0x91] sm:$0xff] }
  0x74   : > { %432 = vst [vmem:[#allocation3 + $0xf0] sm:$0xf] %v352_v42  ;;  %1496 = vmatpush.bf16.msra.mxu3 %v3955_v58  ;;  %v3116_v6 = vor.u32 %v3891_v1, %v3113_v2  ;;  %v3896_v24 = vld [vmem:[#allocation3 + $0x108] sm:$0xf0]  ;;  %v425_v42 = vpack.c.bf16 %v417_v39, %v417_v39  ;;  %v449_v43 = vpack.c.bf16 %v441_v41, %v441_v41  ;;  %v4013_v31 = vld [vmem:[%s5155_s3 + $0x30] sm:$0xff]  ;;  %v4022_v39 = vld [vmem:[%s5155_s3 + $0x78] sm:$0xff] }
  0x75   : > { %456 = vst [vmem:[#allocation3 + $0xf4] sm:$0xf] %v376_v44  ;;  %1524 = vmatpush.bf16.msra.mxu0 %v3964_v60  ;;  %v3892_v19 = vld [vmem:[#allocation3 + $0xec] sm:$0xf]  ;;  %v3120_v27 = vor.u32 %v3896_v24, %v3119_v23  ;;  %v465_v44 = vld [vmem:[#allocation2 + $0x92] sm:$0xff]  ;;  %2600 = vmatpush.bf16.msra.mxu1 %v4013_v31  ;;  %v4035_v31 = vld [vmem:[%s5155_s3 + $0xe0] sm:$0xff] }
  0x76   : > { %1415 = vmatmul.bf16.gmra.mxu0 %v3048_v3  ;;  %408 = vst [vmem:[#allocation3 + $0x110] sm:$0xf] %v400_v54  ;;  %v473_v45 = vpack.c.bf16 %v465_v44, %v465_v44  ;;  %v3888_v40 = vld [vmem:[#allocation3 + $0xc8] sm:$0xf0]  ;;  %2628 = vmatpush.bf16.msrb.mxu2 %v4022_v39 }
  0x77   : > { %1391 = vmatmul.bf16.gmra.mxu3 %v3080_v50  ;;  %480 = vst [vmem:[#allocation3 + $0xf8] sm:$0xf] %v400_v54  ;;  %v3884_v49 = vld [vmem:[#allocation3 + $0xac] sm:$0xf]  ;;  %v3064_v50 = vor.u32 %v3880_v48, %v3063_v47  ;;  %v3092_v46 = vor.u32 %v3888_v40, %v3091_v5  ;;  %v4030_v47 = vld [vmem:[%s5155_s3 + $0xb8] sm:$0xff]  ;;  %v4009_v5 = vld [vmem:[%s5155_s3 + $0x10] sm:$0xff] }
  0x78   : > { %428 = vst [vmem:[#allocation3 + $0x60] sm:$0xf] %v420_v12  ;;  %v3093_v34 = vld [vmem:[#allocation3 + $0xcc] sm:$0xf0]  ;;  %2657 = vmatpush.bf16.msrb.mxu3 %v4030_v47  ;;  %v4028_v40 = vld [vmem:[%s5155_s3 + $0xa8] sm:$0xff] }
  0x79   : > { %1525 = vmatpush.bf16.msra.mxu0 %v3963_v62  ;;  %429 = vst [vmem:[#allocation3 + $0x84] sm:$0xf] %v421_v13  ;;  %v3096_v53 = vor.u32 %v3884_v49, %v3093_v34  ;;  %v3099_v60 = vld [vmem:[#allocation3 + $0xb0] sm:$0xf]  ;;  %v4020_v49 = vld [vmem:[%s5155_s3 + $0x68] sm:$0xff] }
  0x7a   : > { %452 = vst [vmem:[#allocation3 + $0x64] sm:$0xf] %v444_v18  ;;  %v4024_v47 = vld [vmem:[%s5155_s3 + $0x88] sm:$0xff] }
  0x7b   : > { %1362 = vmatmul.bf16.gmra.mxu2 %v3076_v55  ;;  %453 = vst [vmem:[#allocation3 + $0x88] sm:$0xf] %v445_v20 }
  0x7c   : > { %433 = vst [vmem:[#allocation3 + $0x114] sm:$0xf] %v425_v42  ;;  %v3893_v62 = vld [vmem:[#allocation3 + $0xf4] sm:$0xf] }
  0x7d   : > { %v3121_v11 = vld [vmem:[#allocation3 + $0x10c] sm:$0xf0]  ;;  %457 = vst [vmem:[#allocation3 + $0x118] sm:$0xf] %v449_v43 }
  0x7e   : > { %1449 = vmatmul.bf16.gmra.mxu1 %v3088_v61  ;;  %v3124_v22 = vor.u32 %v3892_v19, %v3121_v11  ;;  %481 = vst [vmem:[#allocation3 + $0x11c] sm:$0xf] %v473_v45  ;;  %v3889_v61 = vld [vmem:[#allocation3 + $0xd0] sm:$0xf0]  ;;  %v3135_v10 = vld [vmem:[#allocation3 + $0xf8] sm:$0xf] }
  0x7f   : > { %v3055_v36 = vld [vmem:[#allocation3 + $0x60] sm:$0xf]  ;;  %v3100_v63 = vor.u32 %v3889_v61, %v3099_v60 }
  0x80   : > { %v3879_v37 = vld [vmem:[#allocation3 + $0x80] sm:$0xf0] }
  0x81   : > { %v3875_v59 = vld [vmem:[#allocation3 + $0x64] sm:$0xf]  ;;  %v3056_v38 = vor.u32 %v3879_v37, %v3055_v36 }
  0x82   : > { %v3057_v7 = vld [vmem:[#allocation3 + $0x84] sm:$0xf0]  ;;  %v4027_v61 = vld [vmem:[%s5155_s3 + $0xa0] sm:$0xff] }
  0x83   : > { %v3060_v35 = vor.u32 %v3875_v59, %v3057_v7  ;;  %v3897_v3 = vld [vmem:[#allocation3 + $0x110] sm:$0xf0]  ;;  %v4012_v7 = vld [vmem:[%s5155_s3 + $0x28] sm:$0xff] }
  0x84   : > { %1746 = vst [vmem:[#allocation3 + $0x114] sm:$0xf] %v425_v42  ;;  %v3129_v51 = vld [vmem:[#allocation3 + $0x114] sm:$0xf0]  ;;  %2601 = vmatpush.bf16.msra.mxu1 %v4012_v7  ;;  %v4021_v42 = vld [vmem:[%s5155_s3 + $0x70] sm:$0xff] }
  0x85   : > { %1770 = vst [vmem:[#allocation3 + $0x118] sm:$0xf] %v449_v43  ;;  %v3898_v54 = vld [vmem:[#allocation3 + $0x118] sm:$0xf0]  ;;  %v3132_v2 = vor.u32 %v3893_v62, %v3129_v51  ;;  %2629 = vmatpush.bf16.msrb.mxu2 %v4021_v42  ;;  %v4037_v62 = vld [vmem:[%s5155_s3 + $0xf0] sm:$0xff] }
  0x86   : > { %1420 = vmatmul.bf16.gmra.mxu0 %v3084_v4  ;;  %1794 = vst [vmem:[#allocation3 + $0x11c] sm:$0xf] %v473_v45  ;;  %v3136_v12 = vor.u32 %v3898_v54, %v3135_v10  ;;  %v4010_v45 = vld [vmem:[%s5155_s3 + $0x18] sm:$0xff]  ;;  %v4036_v10 = vld [vmem:[%s5155_s3 + $0xe8] sm:$0xff] }
  0x87   : > { %1396 = vmatmul.bf16.gmra.mxu3 %v3116_v6  ;;  %v3127_v6 = vld [vmem:[#allocation3 + $0xf0] sm:$0xf] }
  0x88   : > { %v3128_v15 = vor.u32 %v3897_v3, %v3127_v6  ;;  %v4029_v3 = vld [vmem:[%s5155_s3 + $0xb0] sm:$0xff] }
  0x89   : > { %2630 = vmatpush.bf16.msrb.mxu2 %v4020_v49  ;;  %2658 = vmatpush.bf16.msrb.mxu3 %v4029_v3 }
  0x8b   : > { %1367 = vmatmul.bf16.gmra.mxu2 %v3112_v16 }
  0x8d   : > { %2659 = vmatpush.bf16.msrb.mxu3 %v4028_v40  ;;  %v4033_v40 = vld [vmem:[%s5155_s3 + $0xd0] sm:$0xff] }
  0x8e   : > { %1454 = vmatmul.bf16.gmra.mxu1 %v3124_v22 }
  0x91   : > { %2660 = vmatpush.bf16.msrb.mxu3 %v4027_v61  ;;  %v4046_v61 = vld [vmem:[%s5155_s3 + $0x138] sm:$0xff] }
  0x96   : > { %1425 = vmatmul.bf16.gmra.mxu0 %v3120_v27 }
  0x97   : > { %1497 = vmatmul.bf16.vlgmr.msra.gmra.mxu3 %v3024_v28 }
  0x9b   : > { %1468 = vmatmul.bf16.vlgmr.msra.gmra.mxu2 %v3020_v32 }
  0xa6   : > { %1526 = vmatmul.bf16.vlgmr.msra.gmra.mxu0 %v3028_v30 }
  0xa7   : > { %1502 = vmatmul.bf16.gmra.mxu3 %v3060_v35 }
  0xab   : > { %1473 = vmatmul.bf16.gmra.mxu2 %v3056_v38  ;;  %v4011_v38 = vld [vmem:[%s5155_s3 + $0x20] sm:$0xff] }
  0xac   : > { %2602 = vmatpush.bf16.msra.mxu1 %v4011_v38 }
  0xb0   : > { %2603 = vmatpush.bf16.msra.mxu1 %v4010_v45  ;;  %v4007_v45 = vld [vmem:[%s5155_s3] sm:$0xff] }
  0xb4   : > { %2604 = vmatpush.bf16.msra.mxu1 %v4009_v5  ;;  %v4023_v5 = vld [vmem:[%s5155_s3 + $0x80] sm:$0xff] }
  0xb6   : > { %1531 = vmatmul.bf16.gmra.mxu0 %v3064_v50  ;;  %v1305_v55 = vpop.f32.mrf.mxu2  ;;  %v4019_v50 = vld [vmem:[%s5155_s3 + $0x60] sm:$0xff] }
  0xb7   : > { %1507 = vmatmul.bf16.gmra.mxu3 %v3096_v53  ;;  %v1306_v56 = vadd.f32 %v4625_v52, %v1305_v55  ;;  %2631 = vmatpush.bf16.msrb.mxu2 %v4019_v50 }
  0xba   : > { %v1334_v57 = vpop.f32.mrf.mxu3 }
  0xbb   : > { %1478 = vmatmul.bf16.gmra.mxu2 %v3092_v46  ;;  %v4628_v58 = vadd.f32 %v1334_v57, %v1306_v56  ;;  %v1324_v26 = vpop.f32.mrf.mxu1  ;;  %v4038_v46 = vld [vmem:[%s5155_s3 + $0xf8] sm:$0xff] }
  0xbc   : > { %v4018_v56 = vld [vmem:[%s5155_s3 + $0x58] sm:$0xff]  ;;  %2686 = vmatpush.bf16.msrb.mxu0 %v4038_v46 }
  0xbd   : > { %2632 = vmatpush.bf16.msrb.mxu2 %v4018_v56 }
  0xbe   : > { %v4634_v4 = vpop.f32.mrf.mxu2 }
  0xc0   : > { %2687 = vmatpush.bf16.msrb.mxu0 %v4037_v62  ;;  %v4032_v62 = vld [vmem:[%s5155_s3 + $0xc8] sm:$0xff] }
  0xc2   : > { %v4630_v0 = vpop.f32.mrf.mxu3 }
  0xc3   : > { %v4632_v1 = vpop.f32.mrf.mxu0  ;;  %v4669_v33 = vpop.f32.mrf.mxu1 }
  0xc4   : > { %v1296_v53 = vadd.f32 %v4625_v52, %v4632_v1  ;;  %2688 = vmatpush.bf16.msrb.mxu0 %v4036_v10  ;;  %v4031_v10 = vld [vmem:[%s5155_s3 + $0xc0] sm:$0xff] }
  0xc6   : > { %1536 = vmatmul.bf16.gmra.mxu0 %v3100_v63  ;;  %v1325_v60 = vadd.f32 %v1324_v26, %v1296_v53  ;;  %v4017_v63 = vld [vmem:[%s5155_s3 + $0x50] sm:$0xff] }
  0xc7   : > { %1512 = vmatmul.bf16.gmra.mxu3 %v3132_v2  ;;  %2633 = vmatpush.bf16.msrb.mxu2 %v4017_v63  ;;  %v4025_v26 = vld [vmem:[%s5155_s3 + $0x90] sm:$0xff] }
  0xc8   : > { %2689 = vmatpush.bf16.msrb.mxu0 %v4035_v31 }
  0xca   : > { %v1339_v8 = vpop.f32.mrf.mxu3 }
  0xcb   : > { %v4636_v19 = vpop.f32.mrf.mxu0  ;;  %1483 = vmatmul.bf16.gmra.mxu2 %v3128_v15  ;;  %v4680_v35 = vpop.f32.mrf.mxu1 }
  0xcc   : > { %v1298_v6 = vadd.f32 %v4625_v52, %v4636_v19 }
  0xce   : > { %v1310_v9 = vpop.f32.mrf.mxu2  ;;  %v1327_v25 = vadd.f32 %v4669_v33, %v1298_v6 }
  0xcf   : > { %v1311_v16 = vadd.f32 %v4625_v52, %v1310_v9  ;;  %v4026_v9 = vld [vmem:[%s5155_s3 + $0x98] sm:$0xff] }
  0xd0   : > { %2661 = vmatpush.bf16.msrb.mxu3 %v4026_v9 }
  0xd1   : > { %v4639_v11 = vadd.f32 %v1339_v8, %v1311_v16  ;;  %v4008_v8 = vld [vmem:[%s5155_s3 + $0x8] sm:$0xff] }
  0xd2   : > { %v4641_v13 = vpop.f32.mrf.mxu3  ;;  %v4016_v16 = vld [vmem:[%s5155_s3 + $0x48] sm:$0xff]  ;;  %2605 = vmatpush.bf16.msra.mxu1 %v4008_v8 }
  0xd3   : > { %v4643_v14 = vpop.f32.mrf.mxu0  ;;  %v4707_v48 = vpop.f32.mrf.mxu1  ;;  %2634 = vmatpush.bf16.msrb.mxu2 %v4016_v16 }
  0xd4   : > { %2662 = vmatpush.bf16.msrb.mxu3 %v4025_v26  ;;  %v1301_v33 = vadd.f32 %v4625_v52, %v4643_v14 }
  0xd6   : > { %1541 = vmatmul.bf16.gmra.mxu0 %v3136_v12  ;;  %v4645_v17 = vpop.f32.mrf.mxu2  ;;  %2606 = vmatpush.bf16.msra.mxu1 %v4007_v45  ;;  %v1330_v3 = vadd.f32 %v4680_v35, %v1301_v33 }
  0xd8   : > { %2663 = vmatpush.bf16.msrb.mxu3 %v4024_v47 }
  0xda   : > { %v4647_v18 = vpop.f32.mrf.mxu3  ;;  %2715 = vmatpush.bf16.msrb.mxu1 %v4046_v61 }
  0xdb   : > { %v4649_v20 = vpop.f32.mrf.mxu0  ;;  %v1440_v55 = vpop.f32.mrf.mxu1 }
  0xdc   : > { %2664 = vmatpush.bf16.msrb.mxu3 %v4023_v5  ;;  %v1303_v35 = vadd.f32 %v4625_v52, %v4649_v20 }
  0xde   : > { %v1353_v22 = vpop.f32.mrf.mxu2  ;;  %v1332_v20 = vadd.f32 %v4707_v48, %v1303_v35  ;;  %v4045_v48 = vld [vmem:[%s5155_s3 + $0x130] sm:$0xff] }
  0xdf   : > { %v1354_v1 = vadd.f32 %v1353_v22, %v1325_v60  ;;  %2716 = vmatpush.bf16.msrb.mxu1 %v4045_v48 }
  0xe1   : > { %v1383_v19 = vadd.f32 %v4647_v18, %v1354_v1  ;;  %v4015_v18 = vld [vmem:[%s5155_s3 + $0x40] sm:$0xff] }
  0xe2   : > { %v4651_v23 = vpop.f32.mrf.mxu3  ;;  %2635 = vmatpush.bf16.msrb.mxu2 %v4015_v18 }
  0xe3   : > { %v4653_v24 = vpop.f32.mrf.mxu0  ;;  %v1442_v12 = vpop.f32.mrf.mxu1 }
  0xe4   : > { %v1412_v7 = vadd.f32 %v4653_v24, %v1383_v19  ;;  %v4034_v24 = vld [vmem:[%s5155_s3 + $0xd8] sm:$0xff] }
  0xe5   : > { %2690 = vmatpush.bf16.msrb.mxu0 %v4034_v24  ;;  %v3971_v24 = vld [vmem:[#allocation3 + $0x4] sm:$0xf] }
  0xe6   : > { %v4658_v27 = vpop.f32.mrf.mxu2 }
  0xe7   : > { %v1356_v38 = vadd.f32 %v4658_v27, %v1327_v25  ;;  %v1441_v27 = vadd.f32 %v1440_v55, %v1412_v7 }
  0xe9   : > { %v1385_v49 = vadd.f32 %v4651_v23, %v1356_v38  ;;  %2691 = vmatpush.bf16.msrb.mxu0 %v4033_v40  ;;  %v1308_v40 = vadd.f32 %v4625_v52, %v4634_v4 }
  0xea   : > { %v4660_v28 = vpop.f32.mrf.mxu3 }
  0xeb   : > { %v4662_v29 = vpop.f32.mrf.mxu0  ;;  %v1445_v53 = vpop.f32.mrf.mxu1  ;;  %v1337_v4 = vadd.f32 %v4630_v0, %v1308_v40  ;;  %v4061_v40 = vld [vmem:[%s5155_s3 + $0x1b0] sm:$0xff] }
  0xec   : > { %v1414_v46 = vadd.f32 %v4662_v29, %v1385_v49 }
  0xed   : > { %2692 = vmatpush.bf16.msrb.mxu0 %v4032_v62 }
  0xee   : > { %v4667_v32 = vpop.f32.mrf.mxu2  ;;  %v1443_v29 = vadd.f32 %v1442_v12, %v1414_v46 }
  0xef   : > { %v1359_v23 = vadd.f32 %v4667_v32, %v1330_v3 }
  0xf1   : > { %v1388_v32 = vadd.f32 %v4660_v28, %v1359_v23  ;;  %2693 = vmatpush.bf16.msrb.mxu0 %v4031_v10 }
  0xf2   : > { %v4671_v21 = vpop.f32.mrf.mxu3 }
  0xf3   : > { %v4673_v59 = vpop.f32.mrf.mxu0  ;;  %v1447_v25 = vpop.f32.mrf.mxu1 }
  0xf4   : > { %v1417_v16 = vadd.f32 %v4673_v59, %v1388_v32 }
  0xf6   : > { %v4678_v30 = vpop.f32.mrf.mxu2  ;;  %v1446_v7 = vadd.f32 %v1445_v53, %v1417_v16 }
  0xf7   : > { %v1361_v19 = vadd.f32 %v4678_v30, %v1332_v20  ;;  %v3435_v20 = vld [vmem:[#allocation3 + $0x8] sm:$0xf] }
  0xf9   : > { %v1390_v38 = vadd.f32 %v4671_v21, %v1361_v19 }
  0xfa   : > { %v4682_v36 = vpop.f32.mrf.mxu3 }
  0xfb   : > { %v4684_v37 = vpop.f32.mrf.mxu0 }
  0xfc   : > { %v1419_v49 = vadd.f32 %v4684_v37, %v1390_v38  ;;  %v1450_v37 = vpop.f32.mrf.mxu1 }
  0xfe   : > { %v4692_v41 = vpop.f32.mrf.mxu2 }
  0xff   : > { %v1364_v33 = vadd.f32 %v4692_v41, %v4628_v58  ;;  %v4044_v58 = vld [vmem:[%s5155_s3 + $0x128] sm:$0xff] }
 0x100   : > { %2717 = vmatpush.bf16.msrb.mxu1 %v4044_v58 }
 0x101   : > { %v1393_v41 = vadd.f32 %v4682_v36, %v1364_v33 }
 0x102   : > { %v4697_v43 = vpop.f32.mrf.mxu3 }
 0x103   : > { %v4699_v44 = vpop.f32.mrf.mxu0 }
 0x104   : > { %v1422_v62 = vadd.f32 %v4699_v44, %v1393_v41 }
 0x106   : > { %v4712_v34 = vpop.f32.mrf.mxu2 }
 0x10a   : > { %v4720_v51 = vpop.f32.mrf.mxu3 }
 0x10b   : > { %v4724_v54 = vpop.f32.mrf.mxu0 }
 0x10e   : > { %v4738_v57 = vpop.f32.mrf.mxu2 }
 0x112   : > { %v4749_v2 = vpop.f32.mrf.mxu3 }
 0x113   : > { %v4753_v15 = vpop.f32.mrf.mxu0 }
 0x116   : > { %v4768_v22 = vpop.f32.mrf.mxu2 }
 0x11a   : > { %v1498_v39 = vpop.f32.mrf.mxu3 }
 0x11b   : > { %v4784_v42 = vpop.f32.mrf.mxu0 }
 0x11e   : > { %v1469_v14 = vpop.f32.mrf.mxu2 }
 0x11f   : > { %v1470_v50 = vadd.f32 %v1469_v14, %v1441_v27 }
 0x121   : > { %v1499_v55 = vadd.f32 %v1498_v39, %v1470_v50 }
 0x122   : > { %v1500_v56 = vpop.f32.mrf.mxu3 }
 0x123   : > { %v1527_v60 = vpop.f32.mrf.mxu0 }
 0x124   : > { %v1528_v63 = vadd.f32 %v1527_v60, %v1499_v55 }
 0x126   : > { %vm1547_vm0 = vcmp.gt.f32.partialorder %v1528_v63, 0.0  ;;  %v1555_v1 = vmul.f32 0.01, %v1528_v63  ;;  %v1471_v6 = vpop.f32.mrf.mxu2 }
 0x127   : > { %v1472_v8 = vadd.f32 %v1471_v6, %v1443_v29  ;;  %v3427_v29 = vld [vmem:[#allocation3] sm:$0xf] }
 0x128   : > { %v1563_v9 = vsel %vm1547_vm0, %v1528_v63, %v1555_v1  ;;  %v1366_v1 = vadd.f32 %v4712_v34, %v1337_v4 }
 0x129   : > { %1571 = vst [vmem:[#allocation2 + $0x11] sm:$0xff] %v1563_v9  ;;  %v1501_v12 = vadd.f32 %v1500_v56, %v1472_v8  ;;  %v1612_v28 = vpack.c.bf16 %v1563_v9, %v1563_v9  ;;  %v1448_v56 = vadd.f32 %v1447_v25, %v1419_v49 }
 0x12a   : > { %v1503_v26 = vpop.f32.mrf.mxu3  ;;  %v1395_v48 = vadd.f32 %v4697_v43, %v1366_v1 }
 0x12b   : > { %v1529_v31 = vpop.f32.mrf.mxu0  ;;  %1620 = vst [vmem:[#allocation3 + $0x28] sm:$0xf] %v1612_v28 }
 0x12c   : > { %v1530_v18 = vadd.f32 %v1529_v31, %v1501_v12  ;;  %1691 = vst [vmem:[#allocation3 + $0x10] sm:$0xf] %v1612_v28  ;;  %v4043_v28 = vld [vmem:[%s5155_s3 + $0x120] sm:$0xff]  ;;  %v1451_v31 = vadd.f32 %v1450_v37, %v1422_v62 }
 0x12d   : > { %2718 = vmatpush.bf16.msrb.mxu1 %v4043_v28  ;;  %v4059_v28 = vld [vmem:[%s5155_s3 + $0x1a0] sm:$0xff] }
 0x12e   : > { %vm1548_vm1 = vcmp.gt.f32.partialorder %v1530_v18, 0.0  ;;  %v1556_v59 = vmul.f32 0.01, %v1530_v18  ;;  %v1474_v30 = vpop.f32.mrf.mxu2 }
 0x12f   : > { %v1475_v39 = vadd.f32 %v1474_v30, %v1446_v7  ;;  %v1369_v30 = vadd.f32 %v4738_v57, %v4639_v11  ;;  %v4062_v11 = vld [vmem:[%s5155_s3 + $0x1b8] sm:$0xff] }
 0x130   : > { %v1564_v45 = vsel %vm1548_vm1, %v1530_v18, %v1556_v59  ;;  %v1580_v47 = vld [vmem:[#allocation2 + $0x10] sm:$0xff]  ;;  %v1452_v18 = vpop.f32.mrf.mxu1  ;;  %2773 = vmatpush.bf16.msra.mxu3 %v4062_v11 }
 0x131   : > { %v1628_v27 = vld [vmem:[#allocation2 + $0x12] sm:$0xff]  ;;  %1572 = vst [vmem:[#allocation2 + $0x21] sm:$0xff] %v1564_v45  ;;  %v1504_v14 = vadd.f32 %v1503_v26, %v1475_v39  ;;  %v1588_v3 = vpack.c.bf16 %v1580_v47, %v1580_v47  ;;  %v1613_v5 = vpack.c.bf16 %v1564_v45, %v1564_v45  ;;  %v1424_v47 = vadd.f32 %v4724_v54, %v1395_v48 }
 0x132   : > { %v1636_v50 = vpack.c.bf16 %v1628_v27, %v1628_v27  ;;  %v1505_v53 = vpop.f32.mrf.mxu3  ;;  %v3429_v21 = vld [vmem:[#allocation3 + $0x24] sm:$0xf0]  ;;  %v4054_v26 = vld [vmem:[%s5155_s3 + $0x178] sm:$0xff]  ;;  %v4053_v45 = vld [vmem:[%s5155_s3 + $0x170] sm:$0xff]  ;;  %v1313_v54 = vadd.f32 %v4625_v52, %v4645_v17 }
 0x133   : > { %v1532_v46 = vpop.f32.mrf.mxu0  ;;  %1596 = vst [vmem:[#allocation3 + $0x24] sm:$0xf] %v1588_v3  ;;  %v3432_v23 = vor.u32 %v3971_v24, %v3429_v21  ;;  %2744 = vmatpush.bf16.msra.mxu2 %v4054_v26  ;;  %v4052_v52 = vld [vmem:[%s5155_s3 + $0x168] sm:$0xff]  ;;  %v1453_v17 = vadd.f32 %v1452_v18, %v1424_v47  ;;  %v4050_v26 = vld [vmem:[%s5155_s3 + $0x158] sm:$0xff]  ;;  %v4049_v47 = vld [vmem:[%s5155_s3 + $0x150] sm:$0xff] }
 0x134   : > { %v1533_v55 = vadd.f32 %v1532_v46, %v1504_v14  ;;  %1644 = vst [vmem:[#allocation3 + $0x2c] sm:$0xf] %v1636_v50  ;;  %v4042_v14 = vld [vmem:[%s5155_s3 + $0x118] sm:$0xff]  ;;  %v1398_v46 = vadd.f32 %v4720_v51, %v1369_v30  ;;  %2774 = vmatpush.bf16.msra.mxu3 %v4061_v40 }
 0x135   : > { %2636 = vmatmul.bf16.vlgmr.msrb.gmra.mxu2 %v3432_v23  ;;  %1667 = vst [vmem:[#allocation3 + $0xc] sm:$0xf] %v1588_v3  ;;  %2719 = vmatpush.bf16.msrb.mxu1 %v4042_v14 }
 0x136   : > { %vm1549_vm2 = vcmp.gt.f32.partialorder %v1533_v55, 0.0  ;;  %v1557_v35 = vmul.f32 0.01, %v1533_v55  ;;  %v1476_v60 = vpop.f32.mrf.mxu2  ;;  %1621 = vst [vmem:[#allocation3 + $0x4c] sm:$0xf] %v1613_v5  ;;  %v1427_v62 = vadd.f32 %v4753_v15, %v1398_v46  ;;  %v4057_v46 = vld [vmem:[%s5155_s3 + $0x190] sm:$0xff] }
 0x137   : > { %v1477_v61 = vadd.f32 %v1476_v60, %v1448_v56  ;;  %1692 = vst [vmem:[#allocation3 + $0x34] sm:$0xf] %v1613_v5  ;;  %2745 = vmatpush.bf16.msra.mxu2 %v4053_v45  ;;  %v1342_v60 = vadd.f32 %v4641_v13, %v1313_v54  ;;  %v4051_v13 = vld [vmem:[%s5155_s3 + $0x160] sm:$0xff] }
 0x138   : > { %v1565_v63 = vsel %vm1549_vm2, %v1533_v55, %v1557_v35  ;;  %v1652_v36 = vld [vmem:[#allocation2 + $0x20] sm:$0xff]  ;;  %1715 = vst [vmem:[#allocation3 + $0x14] sm:$0xf] %v1636_v50  ;;  %v4041_v55 = vld [vmem:[%s5155_s3 + $0x110] sm:$0xff]  ;;  %v4070_v35 = vld [vmem:[%s5155_s3 + $0x1f8] sm:$0xff] }
 0x139   : > { %v1629_v32 = vld [vmem:[#allocation2 + $0x22] sm:$0xff]  ;;  %1573 = vst [vmem:[#allocation2 + $0x31] sm:$0xff] %v1565_v63  ;;  %v1506_v6 = vadd.f32 %v1505_v53, %v1477_v61  ;;  %v1660_v8 = vpack.c.bf16 %v1652_v36, %v1652_v36  ;;  %v4836_v9 = vpack.c.bf16 %v1565_v63, %v1565_v63  ;;  %v1455_v63 = vpop.f32.mrf.mxu1  ;;  %2720 = vmatpush.bf16.msrb.mxu1 %v4041_v55 }
 0x13a   : > { %v3975_v10 = vld [vmem:[#allocation3 + $0x20] sm:$0xf0]  ;;  %v1508_v16 = vpop.f32.mrf.mxu3  ;;  %v4838_v0 = vpack.c.bf16 %v1629_v32, %v1629_v32  ;;  %1763 = vst [vmem:[#allocation3 + $0x1c] sm:$0xf] %v1613_v5  ;;  %v4060_v61 = vld [vmem:[%s5155_s3 + $0x1a8] sm:$0xff]  ;;  %v1371_v1 = vadd.f32 %v4768_v22, %v1342_v60  ;;  %2802 = vmatpush.bf16.msra.mxu0 %v4070_v35 }
 0x13b   : > { %v1534_v19 = vpop.f32.mrf.mxu0  ;;  %v3428_v44 = vor.u32 %v3975_v10, %v3427_v29  ;;  %v3976_v12 = vld [vmem:[#allocation3 + $0x28] sm:$0xf0]  ;;  %1668 = vst [vmem:[#allocation3 + $0x30] sm:$0xf] %v1660_v8  ;;  %2746 = vmatpush.bf16.msra.mxu2 %v4052_v52  ;;  %2775 = vmatpush.bf16.msra.mxu3 %v4060_v61 }
 0x13c   : > { %v1535_v34 = vadd.f32 %v1534_v19, %v1506_v6  ;;  %v3436_v25 = vor.u32 %v3976_v12, %v3435_v20  ;;  %1597 = vst [vmem:[#allocation3 + $0x48] sm:$0xf] %v1660_v8  ;;  %v3972_v57 = vld [vmem:[#allocation3 + $0xc] sm:$0xf]  ;;  %v1400_v48 = vadd.f32 %v4749_v2, %v1371_v1  ;;  %v4058_v2 = vld [vmem:[%s5155_s3 + $0x198] sm:$0xff] }
 0x13d   : > { %2607 = vmatmul.bf16.vlgmr.msra.gmra.mxu1 %v3428_v44  ;;  %1622 = vst [vmem:[#allocation3 + $0x70] sm:$0xf] %v4836_v9  ;;  %v3980_v5 = vld [vmem:[#allocation3 + $0x4c] sm:$0xf]  ;;  %v4069_v44 = vld [vmem:[%s5155_s3 + $0x1f0] sm:$0xff] }
 0x13e   : > { %vm1550_vm3 = vcmp.gt.f32.partialorder %v1535_v34, 0.0  ;;  %v1558_v7 = vmul.f32 0.01, %v1535_v34  ;;  %2665 = vmatmul.bf16.vlgmr.msrb.gmra.mxu3 %v3436_v25  ;;  %v1479_v38 = vpop.f32.mrf.mxu2  ;;  %1645 = vst [vmem:[#allocation3 + $0x50] sm:$0xf] %v4838_v0  ;;  %2803 = vmatpush.bf16.msra.mxu0 %v4069_v44  ;;  %v4056_v60 = vld [vmem:[%s5155_s3 + $0x188] sm:$0xff] }
 0x13f   : > { %v1480_v59 = vadd.f32 %v1479_v38, %v1451_v31  ;;  %1716 = vst [vmem:[#allocation3 + $0x38] sm:$0xf] %v4838_v0  ;;  %2747 = vmatpush.bf16.msra.mxu2 %v4051_v13  ;;  %v1456_v31 = vadd.f32 %v1455_v63, %v1427_v62  ;;  %2776 = vmatpush.bf16.msra.mxu3 %v4059_v28 }
 0x140   : > { %v1566_v39 = vsel %vm1550_vm3, %v1535_v34, %v1558_v7  ;;  %v1582_v43 = vld [vmem:[#allocation2 + $0x30] sm:$0xff]  ;;  %1739 = vst [vmem:[#allocation3 + $0x18] sm:$0xf] %v1660_v8 }
 0x141   : > { %v1630_v33 = vld [vmem:[#allocation2 + $0x32] sm:$0xff]  ;;  %1574 = vst [vmem:[#allocation2 + $0x41] sm:$0xff] %v1566_v39  ;;  %v1509_v24 = vadd.f32 %v1508_v16, %v1480_v59  ;;  %v1590_v27 = vpack.c.bf16 %v1582_v43, %v1582_v43  ;;  %v4864_v50 = vpack.c.bf16 %v1566_v39, %v1566_v39  ;;  %v4040_v59 = vld [vmem:[%s5155_s3 + $0x108] sm:$0xff] }
 0x142   : > { %v4856_v49 = vpack.c.bf16 %v1630_v33, %v1630_v33  ;;  %v3437_v3 = vld [vmem:[#allocation3 + $0x2c] sm:$0xf0]  ;;  %1764 = vst [vmem:[#allocation3 + $0x40] sm:$0xf] %v4836_v9  ;;  %v1510_v58 = vpop.f32.mrf.mxu3  ;;  %v4068_v39 = vld [vmem:[%s5155_s3 + $0x1e8] sm:$0xff]  ;;  %2721 = vmatpush.bf16.msrb.mxu1 %v4040_v59 }
 0x143   : > { %v1537_v53 = vpop.f32.mrf.mxu0  ;;  %v3440_v21 = vor.u32 %v3972_v57, %v3437_v3  ;;  %1598 = vst [vmem:[#allocation3 + $0x6c] sm:$0xf] %v1590_v27  ;;  %v3463_v20 = vld [vmem:[#allocation3 + $0x48] sm:$0xf]  ;;  %2748 = vmatpush.bf16.msra.mxu2 %v4050_v26  ;;  %v1457_v3 = vpop.f32.mrf.mxu1  ;;  %2804 = vmatpush.bf16.msra.mxu0 %v4068_v39 }
 0x144   : > { %v1538_v23 = vadd.f32 %v1537_v53, %v1509_v24  ;;  %v3465_v41 = vld [vmem:[#allocation3 + $0x6c] sm:$0xf0]  ;;  %1646 = vst [vmem:[#allocation3 + $0x74] sm:$0xf] %v4856_v49  ;;  %v1429_v24 = vadd.f32 %v4784_v42, %v1400_v48  ;;  %2777 = vmatpush.bf16.msra.mxu3 %v4058_v2 }
 0x145   : > { %2694 = vmatmul.bf16.vlgmr.msrb.gmra.mxu0 %v3440_v21  ;;  %v3468_v37 = vor.u32 %v3980_v5, %v3465_v41  ;;  %1669 = vst [vmem:[#allocation3 + $0x54] sm:$0xf] %v1590_v27  ;;  %v3471_v8 = vld [vmem:[#allocation3 + $0x50] sm:$0xf]  ;;  %v4067_v21 = vld [vmem:[%s5155_s3 + $0x1e0] sm:$0xff]  ;;  %v4048_v41 = vld [vmem:[%s5155_s3 + $0x148] sm:$0xff] }
 0x146   : > { %vm1551_vm4 = vcmp.gt.f32.partialorder %v1538_v23, 0.0  ;;  %v1559_v51 = vmul.f32 0.01, %v1538_v23  ;;  %v1481_v56 = vpop.f32.mrf.mxu2  ;;  %1623 = vst [vmem:[#allocation3 + $0x94] sm:$0xf] %v4864_v50  ;;  %v1458_v52 = vadd.f32 %v1457_v3, %v1429_v24 }
 0x147   : > { %v1482_v4 = vadd.f32 %v1481_v56, %v1453_v17  ;;  %2641 = vmatmul.bf16.gmra.mxu2 %v3468_v37  ;;  %1740 = vst [vmem:[#allocation3 + $0x3c] sm:$0xf] %v1590_v27  ;;  %v4039_v37 = vld [vmem:[%s5155_s3 + $0x100] sm:$0xff]  ;;  %2805 = vmatpush.bf16.msra.mxu0 %v4067_v21  ;;  %v4066_v56 = vld [vmem:[%s5155_s3 + $0x1d8] sm:$0xff] }
 0x148   : > { %v1567_v29 = vsel %vm1551_vm4, %v1538_v23, %v1559_v51  ;;  %v1654_v36 = vld [vmem:[#allocation2 + $0x40] sm:$0xff]  ;;  %1693 = vst [vmem:[#allocation3 + $0x58] sm:$0xf] %v4836_v9  ;;  %2749 = vmatpush.bf16.msra.mxu2 %v4049_v47  ;;  %2778 = vmatpush.bf16.msra.mxu3 %v4057_v46 }
 0x149   : > { %v1631_v32 = vld [vmem:[#allocation2 + $0x42] sm:$0xff]  ;;  %1575 = vst [vmem:[#allocation2 + $0x51] sm:$0xff] %v1567_v29  ;;  %v1511_v6 = vadd.f32 %v1510_v58, %v1482_v4  ;;  %v1662_v10 = vpack.c.bf16 %v1654_v36, %v1654_v36  ;;  %v4894_v15 = vpack.c.bf16 %v1567_v29, %v1567_v29  ;;  %2722 = vmatpush.bf16.msrb.mxu1 %v4039_v37 }
 0x14a   : > { %v3984_v16 = vld [vmem:[#allocation3 + $0x68] sm:$0xf0]  ;;  %v4896_v19 = vpack.c.bf16 %v1631_v32, %v1631_v32  ;;  %1694 = vst [vmem:[#allocation3 + $0x7c] sm:$0xf] %v4864_v50  ;;  %v1513_v38 = vpop.f32.mrf.mxu3  ;;  %v4047_v29 = vld [vmem:[%s5155_s3 + $0x140] sm:$0xff] }
 0x14b   : > { %v1539_v9 = vpop.f32.mrf.mxu0  ;;  %v3464_v12 = vor.u32 %v3984_v16, %v3463_v20  ;;  %v3985_v22 = vld [vmem:[#allocation3 + $0x70] sm:$0xf0]  ;;  %1670 = vst [vmem:[#allocation3 + $0x78] sm:$0xf] %v1662_v10  ;;  %2806 = vmatpush.bf16.msra.mxu0 %v4066_v56  ;;  %v4074_v56 = vld [vmem:[%s5155_s3 + $0x218] sm:$0xff] }
 0x14c   : > { %v1540_v34 = vadd.f32 %v1539_v9, %v1511_v6  ;;  %v3472_v25 = vor.u32 %v3985_v22, %v3471_v8  ;;  %1599 = vst [vmem:[#allocation3 + $0x90] sm:$0xf] %v1662_v10  ;;  %v3981_v14 = vld [vmem:[#allocation3 + $0x54] sm:$0xf]  ;;  %2750 = vmatpush.bf16.msra.mxu2 %v4048_v41  ;;  %2779 = vmatpush.bf16.msra.mxu3 %v4056_v60  ;;  %v4055_v9 = vld [vmem:[%s5155_s3 + $0x180] sm:$0xff] }
 0x14d   : > { %2612 = vmatmul.bf16.gmra.mxu1 %v3464_v12  ;;  %1624 = vst [vmem:[#allocation3 + $0xb8] sm:$0xf] %v4894_v15  ;;  %v3989_v42 = vld [vmem:[#allocation3 + $0x94] sm:$0xf] }
 0x14e   : > { %vm1552_vm5 = vcmp.gt.f32.partialorder %v1540_v34, 0.0  ;;  %v1560_v18 = vmul.f32 0.01, %v1540_v34  ;;  %2670 = vmatmul.bf16.gmra.mxu3 %v3472_v25  ;;  %v1484_v7 = vpop.f32.mrf.mxu2  ;;  %1647 = vst [vmem:[#allocation3 + $0x98] sm:$0xf] %v4896_v19  ;;  %v4064_v25 = vld [vmem:[%s5155_s3 + $0x1c8] sm:$0xff] }
 0x14f   : > { %v1485_v30 = vadd.f32 %v1484_v7, %v1456_v31  ;;  %1717 = vst [vmem:[#allocation3 + $0x5c] sm:$0xf] %v4856_v49  ;;  %v3973_v41 = vld [vmem:[#allocation3 + $0x14] sm:$0xf]  ;;  %v3978_v37 = vld [vmem:[#allocation3 + $0x38] sm:$0xf0] }
 0x150   : > { %v1568_v43 = vsel %vm1552_vm5, %v1540_v34, %v1560_v18  ;;  %v1584_v33 = vld [vmem:[#allocation2 + $0x50] sm:$0xff]  ;;  %1718 = vst [vmem:[#allocation3 + $0x80] sm:$0xf] %v4896_v19  ;;  %2751 = vmatpush.bf16.msra.mxu2 %v4047_v29  ;;  %v4078_v34 = vld [vmem:[%s5155_s3 + $0x238] sm:$0xff]  ;;  %2780 = vmatpush.bf16.msra.mxu3 %v4055_v9 }
 0x151   : > { %v1632_v45 = vld [vmem:[#allocation2 + $0x52] sm:$0xff]  ;;  %1576 = vst [vmem:[#allocation2 + $0x61] sm:$0xff] %v1568_v43  ;;  %v1514_v27 = vadd.f32 %v1513_v38, %v1485_v30  ;;  %v1592_v11 = vpack.c.bf16 %v1584_v33, %v1584_v33  ;;  %v4928_v53 = vpack.c.bf16 %v1568_v43, %v1568_v43  ;;  %2831 = vmatpush.bf16.msra.mxu1 %v4078_v34  ;;  %v4063_v30 = vld [vmem:[%s5155_s3 + $0x1c0] sm:$0xff]  ;;  %v3986_v29 = vld [vmem:[#allocation3 + $0x78] sm:$0xf0] }
 0x152   : > { %v4926_v57 = vpack.c.bf16 %v1632_v45, %v1632_v45  ;;  %v3473_v54 = vld [vmem:[#allocation3 + $0x74] sm:$0xf0]  ;;  %1741 = vst [vmem:[#allocation3 + $0x60] sm:$0xf] %v1662_v10  ;;  %v1515_v61 = vpop.f32.mrf.mxu3  ;;  %v4065_v10 = vld [vmem:[%s5155_s3 + $0x1d0] sm:$0xff] }
 0x153   : > { %v1542_v5 = vpop.f32.mrf.mxu0  ;;  %v3476_v40 = vor.u32 %v3981_v14, %v3473_v54  ;;  %1600 = vst [vmem:[#allocation3 + $0xb4] sm:$0xf] %v1592_v11  ;;  %v3499_v32 = vld [vmem:[#allocation3 + $0x90] sm:$0xf]  ;;  %2807 = vmatpush.bf16.msra.mxu0 %v4065_v10 }
 0x154   : > { %v1543_v23 = vadd.f32 %v1542_v5, %v1514_v27  ;;  %v3501_v58 = vld [vmem:[#allocation3 + $0xb4] sm:$0xf0]  ;;  %1648 = vst [vmem:[#allocation3 + $0xbc] sm:$0xf] %v4926_v57  ;;  %v4077_v33 = vld [vmem:[%s5155_s3 + $0x230] sm:$0xff] }
 0x155   : > { %2699 = vmatmul.bf16.gmra.mxu0 %v3476_v40  ;;  %v3504_v17 = vor.u32 %v3989_v42, %v3501_v58  ;;  %1671 = vst [vmem:[#allocation3 + $0x9c] sm:$0xf] %v1592_v11  ;;  %v3507_v13 = vld [vmem:[#allocation3 + $0x98] sm:$0xf]  ;;  %2832 = vmatpush.bf16.msra.mxu1 %v4077_v33 }
 0x156   : > { %vm1553_vm6 = vcmp.gt.f32.partialorder %v1543_v23, 0.0  ;;  %v1561_v55 = vmul.f32 0.01, %v1543_v23  ;;  %v1486_v51 = vpop.f32.mrf.mxu2  ;;  %1625 = vst [vmem:[#allocation3 + $0xdc] sm:$0xf] %v4928_v53 }
 0x157   : > { %v1487_v35 = vadd.f32 %v1486_v51, %v1458_v52  ;;  %2646 = vmatmul.bf16.gmra.mxu2 %v3504_v17  ;;  %1742 = vst [vmem:[#allocation3 + $0x84] sm:$0xf] %v1592_v11  ;;  %2808 = vmatpush.bf16.msra.mxu0 %v4064_v25  ;;  %v3445_v42 = vld [vmem:[#allocation3 + $0x34] sm:$0xf0]  ;;  %v4075_v17 = vld [vmem:[%s5155_s3 + $0x220] sm:$0xff] }
 0x158   : > { %v1569_v4 = vsel %vm1553_vm6, %v1543_v23, %v1561_v55  ;;  %v1656_v62 = vld [vmem:[#allocation2 + $0x60] sm:$0xff]  ;;  %1765 = vst [vmem:[#allocation3 + $0x64] sm:$0xf] %v4864_v50  ;;  %v3448_v52 = vor.u32 %v3973_v41, %v3445_v42  ;;  %v3451_v51 = vld [vmem:[#allocation3 + $0x18] sm:$0xf] }
 0x159   : > { %v1633_v63 = vld [vmem:[#allocation2 + $0x62] sm:$0xff]  ;;  %1577 = vst [vmem:[#allocation2 + $0x71] sm:$0xff] %v1569_v4  ;;  %v1516_v36 = vadd.f32 %v1515_v61, %v1487_v35  ;;  %v1664_v1 = vpack.c.bf16 %v1656_v62, %v1656_v62  ;;  %v4954_v6 = vpack.c.bf16 %v1569_v4, %v1569_v4  ;;  %v3982_v61 = vld [vmem:[#allocation3 + $0x5c] sm:$0xf] }
 0x15a   : > { %v3993_v20 = vld [vmem:[#allocation3 + $0xb0] sm:$0xf0]  ;;  %v4956_v8 = vpack.c.bf16 %v1633_v63, %v1633_v63  ;;  %1766 = vst [vmem:[#allocation3 + $0x88] sm:$0xf] %v4894_v15  ;;  %v3453_v35 = vld [vmem:[#allocation3 + $0x3c] sm:$0xf0] }
 0x15b   : > { %v1544_v16 = vpop.f32.mrf.mxu0  ;;  %v3500_v44 = vor.u32 %v3993_v20, %v3499_v32  ;;  %v3994_v50 = vld [vmem:[#allocation3 + $0xb8] sm:$0xf0]  ;;  %1672 = vst [vmem:[#allocation3 + $0xc0] sm:$0xf] %v1664_v1  ;;  %2809 = vmatpush.bf16.msra.mxu0 %v4063_v30  ;;  %v3481_v60 = vld [vmem:[#allocation3 + $0x7c] sm:$0xf0] }
 0x15c   : > { %v1545_v12 = vadd.f32 %v1544_v16, %v1516_v36  ;;  %v3508_v22 = vor.u32 %v3994_v50, %v3507_v13  ;;  %1601 = vst [vmem:[#allocation3 + $0xd8] sm:$0xf] %v1664_v1  ;;  %v3990_v18 = vld [vmem:[#allocation3 + $0x9c] sm:$0xf]  ;;  %v3484_v62 = vor.u32 %v3982_v61, %v3481_v60  ;;  %v4073_v63 = vld [vmem:[%s5155_s3 + $0x210] sm:$0xff]  ;;  %v4072_v20 = vld [vmem:[%s5155_s3 + $0x208] sm:$0xff] }
 0x15d   : > { %2617 = vmatmul.bf16.gmra.mxu1 %v3500_v44  ;;  %1626 = vst [vmem:[#allocation3 + $0x100] sm:$0xf] %v4954_v6  ;;  %v3479_v32 = vld [vmem:[#allocation3 + $0x58] sm:$0xf]  ;;  %v4006_v60 = vld [vmem:[#allocation3 + $0x118] sm:$0xf0] }
 0x15e   : > { %vm1554_vm7 = vcmp.gt.f32.partialorder %v1545_v12, 0.0  ;;  %v1562_v28 = vmul.f32 0.01, %v1545_v12  ;;  %2675 = vmatmul.bf16.gmra.mxu3 %v3508_v22  ;;  %1649 = vst [vmem:[#allocation3 + $0xe0] sm:$0xf] %v4956_v8  ;;  %v3480_v13 = vor.u32 %v3986_v29, %v3479_v32 }
 0x15f   : > { %1695 = vst [vmem:[#allocation3 + $0xa0] sm:$0xf] %v4894_v15  ;;  %v3998_v15 = vld [vmem:[#allocation3 + $0xdc] sm:$0xf]  ;;  %v3987_v36 = vld [vmem:[#allocation3 + $0x80] sm:$0xf0] }
 0x160   : > { %v1570_v26 = vsel %vm1554_vm7, %v1545_v12, %v1562_v28  ;;  %v1586_v31 = vld [vmem:[#allocation2 + $0x70] sm:$0xff]  ;;  %1696 = vst [vmem:[#allocation3 + $0xc4] sm:$0xf] %v4928_v53  ;;  %v3983_v10 = vld [vmem:[#allocation3 + $0x64] sm:$0xf] }
 0x161   : > { %v1634_v48 = vld [vmem:[#allocation2 + $0x72] sm:$0xff]  ;;  %1578 = vst [vmem:[#allocation2 + $0x81] sm:$0xff] %v1570_v26  ;;  %v1594_v7 = vpack.c.bf16 %v1586_v31, %v1586_v31  ;;  %v1690_v27 = vpack.c.bf16 %v1570_v26, %v1570_v26  ;;  %v4071_v12 = vld [vmem:[%s5155_s3 + $0x200] sm:$0xff] }
 0x162   : > { %v1642_v38 = vpack.c.bf16 %v1634_v48, %v1634_v48  ;;  %v3509_v59 = vld [vmem:[#allocation3 + $0xbc] sm:$0xf0]  ;;  %1719 = vst [vmem:[#allocation3 + $0xa4] sm:$0xf] %v4926_v57 }
 0x163   : > { %v3512_v2 = vor.u32 %v3990_v18, %v3509_v59  ;;  %1602 = vst [vmem:[#allocation3 + $0xfc] sm:$0xf] %v1594_v7  ;;  %v3535_v14 = vld [vmem:[#allocation3 + $0xd8] sm:$0xf] }
 0x164   : > { %v3537_v39 = vld [vmem:[#allocation3 + $0xfc] sm:$0xf0]  ;;  %1650 = vst [vmem:[#allocation3 + $0x104] sm:$0xf] %v1642_v38 }
 0x165   : > { %2704 = vmatmul.bf16.gmra.mxu0 %v3512_v2  ;;  %v3540_v43 = vor.u32 %v3998_v15, %v3537_v39  ;;  %1673 = vst [vmem:[#allocation3 + $0xe4] sm:$0xf] %v1594_v7  ;;  %v3543_v54 = vld [vmem:[#allocation3 + $0xe0] sm:$0xf]  ;;  %v4005_v39 = vld [vmem:[#allocation3 + $0x110] sm:$0xf0] }
 0x166   : > { %1720 = vst [vmem:[#allocation3 + $0xc8] sm:$0xf] %v4956_v8  ;;  %v3515_v34 = vld [vmem:[#allocation3 + $0xa0] sm:$0xf] }
 0x167   : > { %2651 = vmatmul.bf16.gmra.mxu2 %v3540_v43  ;;  %1743 = vst [vmem:[#allocation3 + $0xa8] sm:$0xf] %v1664_v1  ;;  %v3487_v1 = vld [vmem:[#allocation3 + $0x60] sm:$0xf]  ;;  %v3995_v22 = vld [vmem:[#allocation3 + $0xc0] sm:$0xf0] }
 0x168   : > { %v1658_v45 = vld [vmem:[#allocation2 + $0x80] sm:$0xff]  ;;  %1744 = vst [vmem:[#allocation3 + $0xcc] sm:$0xf] %v1594_v7  ;;  %v3516_v25 = vor.u32 %v3995_v22, %v3515_v34 }
 0x169   : > { %v1706_v47 = vld [vmem:[#allocation2 + $0x82] sm:$0xff]  ;;  %v1666_v24 = vpack.c.bf16 %v1658_v45, %v1658_v45  ;;  %1767 = vst [vmem:[#allocation3 + $0xac] sm:$0xf] %v4928_v53 }
 0x16a   : > { %v4002_v11 = vld [vmem:[#allocation3 + $0xf8] sm:$0xf0]  ;;  %1768 = vst [vmem:[#allocation3 + $0xd0] sm:$0xf] %v4954_v6  ;;  %v1714_v5 = vpack.c.bf16 %v1706_v47, %v1706_v47  ;;  %v4076_v53 = vld [vmem:[%s5155_s3 + $0x228] sm:$0xff] }
 0x16b   : > { %v3536_v3 = vor.u32 %v4002_v11, %v3535_v14  ;;  %v4003_v21 = vld [vmem:[#allocation3 + $0x100] sm:$0xf0]  ;;  %1674 = vst [vmem:[#allocation3 + $0x108] sm:$0xf] %v1666_v24  ;;  %2833 = vmatpush.bf16.msra.mxu1 %v4076_v53 }
 0x16c   : > { %v3544_v40 = vor.u32 %v4003_v21, %v3543_v54  ;;  %1697 = vst [vmem:[#allocation3 + $0xe8] sm:$0xf] %v4954_v6  ;;  %v3999_v46 = vld [vmem:[#allocation3 + $0xe4] sm:$0xf]  ;;  %v3488_v6 = vor.u32 %v3987_v36, %v3487_v1 }
 0x16d   : > { %2622 = vmatmul.bf16.gmra.mxu1 %v3536_v3  ;;  %1698 = vst [vmem:[#allocation3 + $0x10c] sm:$0xf] %v1690_v27  ;;  %v3517_v16 = vld [vmem:[#allocation3 + $0xc4] sm:$0xf0]  ;;  %v3991_v50 = vld [vmem:[#allocation3 + $0xa4] sm:$0xf] }
 0x16e   : > { %2680 = vmatmul.bf16.gmra.mxu3 %v3544_v40  ;;  %1721 = vst [vmem:[#allocation3 + $0xec] sm:$0xf] %v1642_v38  ;;  %v3520_v9 = vor.u32 %v3991_v50, %v3517_v16  ;;  %v3523_v26 = vld [vmem:[#allocation3 + $0xa8] sm:$0xf] }
 0x16f   : > { %1722 = vst [vmem:[#allocation3 + $0x110] sm:$0xf] %v1714_v5  ;;  %2834 = vmatpush.bf16.msra.mxu1 %v4075_v17  ;;  %v3996_v28 = vld [vmem:[#allocation3 + $0xc8] sm:$0xf0] }
 0x170   : > { %1745 = vst [vmem:[#allocation3 + $0xf0] sm:$0xf] %v1666_v24  ;;  %v3524_v31 = vor.u32 %v3996_v28, %v3523_v26  ;;  %v3992_v18 = vld [vmem:[#allocation3 + $0xac] sm:$0xf]  ;;  %v3561_v24 = vld [vmem:[#allocation3 + $0x114] sm:$0xf0] }
 0x171   : > { %1769 = vst [vmem:[#allocation3 + $0xf4] sm:$0xf] %v1690_v27  ;;  %v3525_v48 = vld [vmem:[#allocation3 + $0xcc] sm:$0xf0] }
 0x172   : > { %v3545_v23 = vld [vmem:[#allocation3 + $0x104] sm:$0xf0]  ;;  %1787 = vst [vmem:[#allocation3 + $0x20] sm:$0xf] %v4838_v0  ;;  %v3977_v0 = vld [vmem:[#allocation3 + $0x30] sm:$0xf0] }
 0x173   : > { %v3548_v58 = vor.u32 %v3999_v46, %v3545_v23  ;;  %1788 = vst [vmem:[#allocation3 + $0x44] sm:$0xf] %v4856_v49  ;;  %v3443_v49 = vld [vmem:[#allocation3 + $0x10] sm:$0xf]  ;;  %2835 = vmatpush.bf16.msra.mxu1 %v4074_v56  ;;  %v3551_v43 = vld [vmem:[#allocation3 + $0xe8] sm:$0xf] }
 0x174   : > { %1789 = vst [vmem:[#allocation3 + $0x68] sm:$0xf] %v4896_v19  ;;  %v3444_v55 = vor.u32 %v3977_v0, %v3443_v49  ;;  %v3452_v19 = vor.u32 %v3978_v37, %v3451_v51  ;;  %v4004_v2 = vld [vmem:[#allocation3 + $0x108] sm:$0xf0] }
 0x175   : > { %2709 = vmatmul.bf16.gmra.mxu0 %v3548_v58  ;;  %1790 = vst [vmem:[#allocation3 + $0x8c] sm:$0xf] %v4926_v57  ;;  %v3974_v57 = vld [vmem:[#allocation3 + $0x1c] sm:$0xf]  ;;  %v4000_v59 = vld [vmem:[#allocation3 + $0xec] sm:$0xf]  ;;  %v3552_v33 = vor.u32 %v4004_v2, %v3551_v43 }
 0x176   : > { %1791 = vst [vmem:[#allocation3 + $0xb0] sm:$0xf] %v4956_v8  ;;  %v3456_v4 = vor.u32 %v3974_v57, %v3453_v35  ;;  %v3489_v8 = vld [vmem:[#allocation3 + $0x84] sm:$0xf0]  ;;  %v3553_v7 = vld [vmem:[#allocation3 + $0x10c] sm:$0xf0] }
 0x177   : > { %2752 = vmatmul.bf16.vlgmr.msra.gmra.mxu2 %v3448_v52  ;;  %1792 = vst [vmem:[#allocation3 + $0xd4] sm:$0xf] %v1642_v38  ;;  %2836 = vmatpush.bf16.msra.mxu1 %v4073_v63  ;;  %v3492_v44 = vor.u32 %v3983_v10, %v3489_v8  ;;  %v3528_v38 = vor.u32 %v3992_v18, %v3525_v48  ;;  %v3559_v15 = vld [vmem:[#allocation3 + $0xf0] sm:$0xf]  ;;  %v5056_v48 = vld [vmem:[%s5156_s4] ss:$0 sm:$0xff] }
 0x178   : > { %1793 = vst [vmem:[#allocation3 + $0xf8] sm:$0xf] %v1714_v5  ;;  %v3556_v30 = vor.u32 %v4000_v59, %v3553_v7  ;;  %v3560_v45 = vor.u32 %v4005_v39, %v3559_v15  ;;  %v4001_v47 = vld [vmem:[#allocation3 + $0xf4] sm:$0xf] }
 0x179   : > { %v3564_v27 = vor.u32 %v4001_v47, %v3561_v24  ;;  %v3459_v3 = vld [vmem:[#allocation3 + $0x20] sm:$0xf] }
 0x17a   : > { %v3979_v14 = vld [vmem:[#allocation3 + $0x40] sm:$0xf0] }
 0x17b   : > { %2837 = vmatpush.bf16.msra.mxu1 %v4072_v20  ;;  %v3460_v54 = vor.u32 %v3979_v14, %v3459_v3  ;;  %v3495_v53 = vld [vmem:[#allocation3 + $0x68] sm:$0xf] }
 0x17c   : > { %v3988_v5 = vld [vmem:[#allocation3 + $0x88] sm:$0xf0] }
 0x17d   : > { %2723 = vmatmul.bf16.vlgmr.msrb.gmra.mxu1 %v3444_v55  ;;  %v3496_v42 = vor.u32 %v3988_v5, %v3495_v53  ;;  %v3531_v0 = vld [vmem:[#allocation3 + $0xb0] sm:$0xf] }
 0x17e   : > { %2781 = vmatmul.bf16.vlgmr.msra.gmra.mxu3 %v3452_v19  ;;  %v3997_v52 = vld [vmem:[#allocation3 + $0xd0] sm:$0xf0] }
 0x17f   : > { %2838 = vmatpush.bf16.msra.mxu1 %v4071_v12  ;;  %v3532_v37 = vor.u32 %v3997_v52, %v3531_v0  ;;  %v3567_v57 = vld [vmem:[#allocation3 + $0xf8] sm:$0xf] }
 0x180   : > { %v3568_v61 = vor.u32 %v4006_v60, %v3567_v57 }
 0x185   : > { %2810 = vmatmul.bf16.vlgmr.msra.gmra.mxu0 %v3456_v4 }
 0x187   : > { %2757 = vmatmul.bf16.gmra.mxu2 %v3484_v62 }
 0x18d   : > { %2728 = vmatmul.bf16.gmra.mxu1 %v3480_v13 }
 0x18e   : > { %2786 = vmatmul.bf16.gmra.mxu3 %v3488_v6 }
 0x195   : > { %2815 = vmatmul.bf16.gmra.mxu0 %v3492_v44 }
 0x197   : > { %2762 = vmatmul.bf16.gmra.mxu2 %v3520_v9 }
 0x19d   : > { %2733 = vmatmul.bf16.gmra.mxu1 %v3516_v25 }
 0x19e   : > { %2791 = vmatmul.bf16.gmra.mxu3 %v3524_v31 }
 0x1a5   : > { %2820 = vmatmul.bf16.gmra.mxu0 %v3528_v38 }
 0x1a7   : > { %2767 = vmatmul.bf16.gmra.mxu2 %v3556_v30 }
 0x1ad   : > { %2738 = vmatmul.bf16.gmra.mxu1 %v3552_v33 }
 0x1ae   : > { %2796 = vmatmul.bf16.gmra.mxu3 %v3560_v45 }
 0x1b5   : > { %2825 = vmatmul.bf16.gmra.mxu0 %v3564_v27 }
 0x1b8   : > { %v2637_v23 = vpop.f32.mrf.mxu2 }
 0x1ba   : > { %v2608_v11 = vpop.f32.mrf.mxu1 }
 0x1bb   : > { %v2609_v7 = vadd.f32 %v5056_v48, %v2608_v11 }
 0x1bd   : > { %2839 = vmatmul.bf16.vlgmr.msra.gmra.mxu1 %v3460_v54  ;;  %v2638_v30 = vadd.f32 %v2637_v23, %v2609_v7 }
 0x1c0   : > { %v2639_v49 = vpop.f32.mrf.mxu2 }
 0x1c1   : > { %v2666_v58 = vpop.f32.mrf.mxu3 }
 0x1c2   : > { %v2610_v21 = vpop.f32.mrf.mxu1  ;;  %v2695_v41 = vpop.f32.mrf.mxu0  ;;  %v2667_v15 = vadd.f32 %v2666_v58, %v2638_v30 }
 0x1c3   : > { %v2611_v43 = vadd.f32 %v5056_v48, %v2610_v21 }
 0x1c4   : > { %v2696_v33 = vadd.f32 %v2695_v41, %v2667_v15  ;;  %v2861_v15 = vld [vmem:[%s4309_s25 + $0x8] sm:$0xff] }
 0x1c5   : > { %v2640_v24 = vadd.f32 %v2639_v49, %v2611_v43  ;;  %v2860_v49 = vld [vmem:[%s4309_s25] sm:$0xff] }
 0x1c9   : > { %v2668_v55 = vpop.f32.mrf.mxu3 }
 0x1ca   : > { %v5009_v40 = vpop.f32.mrf.mxu1  ;;  %v2697_v51 = vpop.f32.mrf.mxu0  ;;  %v2669_v14 = vadd.f32 %v2668_v55, %v2640_v24 }
 0x1cb   : > { %v2642_v56 = vpop.f32.mrf.mxu2  ;;  %v2614_v11 = vadd.f32 %v5056_v48, %v5009_v40 }
 0x1cc   : > { %v2698_v53 = vadd.f32 %v2697_v51, %v2669_v14 }
 0x1cd   : > { %2844 = vmatmul.bf16.gmra.mxu1 %v3496_v42  ;;  %v2643_v23 = vadd.f32 %v2642_v56, %v2614_v11 }
 0x1d1   : > { %v2671_v35 = vpop.f32.mrf.mxu3 }
 0x1d2   : > { %v5011_v46 = vpop.f32.mrf.mxu1  ;;  %v2700_v62 = vpop.f32.mrf.mxu0  ;;  %v2672_v52 = vadd.f32 %v2671_v35, %v2643_v23 }
 0x1d3   : > { %v2644_v63 = vpop.f32.mrf.mxu2  ;;  %v2616_v55 = vadd.f32 %v5056_v48, %v5011_v46 }
 0x1d4   : > { %v2701_v40 = vadd.f32 %v2700_v62, %v2672_v52 }
 0x1d9   : > { %v5019_v29 = vpop.f32.mrf.mxu3 }
 0x1da   : > { %v5013_v17 = vpop.f32.mrf.mxu1  ;;  %v5023_v32 = vpop.f32.mrf.mxu0 }
 0x1db   : > { %v5025_v1 = vpop.f32.mrf.mxu2  ;;  %v2619_v62 = vadd.f32 %v5056_v48, %v5013_v17 }
 0x1dd   : > { %2849 = vmatmul.bf16.gmra.mxu1 %v3532_v37 }
 0x1e1   : > { %v5027_v6 = vpop.f32.mrf.mxu3 }
 0x1e2   : > { %v5015_v19 = vpop.f32.mrf.mxu1  ;;  %v5029_v20 = vpop.f32.mrf.mxu0 }
 0x1e3   : > { %v5031_v10 = vpop.f32.mrf.mxu2 }
 0x1e9   : > { %v5033_v16 = vpop.f32.mrf.mxu3 }
 0x1ea   : > { %v5017_v4 = vpop.f32.mrf.mxu1  ;;  %v5035_v44 = vpop.f32.mrf.mxu0 }
 0x1eb   : > { %v5037_v9 = vpop.f32.mrf.mxu2 }
 0x1ed   : > { %2854 = vmatmul.bf16.gmra.mxu1 %v3568_v61 }
 0x1f1   : > { %v5039_v12 = vpop.f32.mrf.mxu3 }
 0x1f2   : > { %v5021_v36 = vpop.f32.mrf.mxu1  ;;  %v5043_v28 = vpop.f32.mrf.mxu0 }
 0x1f3   : > { %v5045_v34 = vpop.f32.mrf.mxu2 }
 0x1f9   : > { %v5047_v25 = vpop.f32.mrf.mxu3 }
 0x1fa   : > { %v2724_v13 = vpop.f32.mrf.mxu1  ;;  %v5051_v31 = vpop.f32.mrf.mxu0 }
 0x1fb   : > { %v2753_v38 = vpop.f32.mrf.mxu2  ;;  %v2725_v27 = vadd.f32 %v2724_v13, %v2696_v33  ;;  %v2645_v13 = vadd.f32 %v2644_v63, %v2616_v55 }
 0x1fd   : > { %v2754_v5 = vadd.f32 %v2753_v38, %v2725_v27  ;;  %v2674_v7 = vadd.f32 %v5019_v29, %v2645_v13 }
 0x1ff   : > { %v2703_v43 = vadd.f32 %v5023_v32, %v2674_v7 }
 0x201   : > { %v2782_v59 = vpop.f32.mrf.mxu3 }
 0x202   : > { %v2726_v8 = vpop.f32.mrf.mxu1  ;;  %v2811_v2 = vpop.f32.mrf.mxu0  ;;  %v2783_v42 = vadd.f32 %v2782_v59, %v2754_v5  ;;  %v2862_v5 = vld [vmem:[%s4309_s25 + $0x10] sm:$0xff] }
 0x203   : > { %v2755_v45 = vpop.f32.mrf.mxu2  ;;  %v2727_v21 = vadd.f32 %v2726_v8, %v2698_v53  ;;  %v2621_v53 = vadd.f32 %v5056_v48, %v5015_v19 }
 0x204   : > { %v2812_v0 = vadd.f32 %v2811_v2, %v2783_v42 }
 0x205   : > { %v2756_v57 = vadd.f32 %v2755_v45, %v2727_v21 }
 0x209   : > { %v2784_v47 = vpop.f32.mrf.mxu3 }
 0x20a   : > { %v2729_v50 = vpop.f32.mrf.mxu1  ;;  %v2813_v3 = vpop.f32.mrf.mxu0  ;;  %v2785_v51 = vadd.f32 %v2784_v47, %v2756_v57  ;;  %v2648_v47 = vadd.f32 %v5025_v1, %v2619_v62  ;;  %v2863_v57 = vld [vmem:[%s4309_s25 + $0x18] sm:$0xff] }
 0x20b   : > { %v2758_v58 = vpop.f32.mrf.mxu2  ;;  %v2730_v8 = vadd.f32 %v2729_v50, %v2701_v40 }
 0x20c   : > { %v2814_v38 = vadd.f32 %v2813_v3, %v2785_v51  ;;  %v2677_v14 = vadd.f32 %v5027_v6, %v2648_v47  ;;  %v2650_v6 = vadd.f32 %v5031_v10, %v2621_v53 }
 0x20d   : > { %v2759_v63 = vadd.f32 %v2758_v58, %v2730_v8 }
 0x211   : > { %v2787_v41 = vpop.f32.mrf.mxu3 }
 0x212   : > { %v5041_v22 = vpop.f32.mrf.mxu1  ;;  %v2816_v61 = vpop.f32.mrf.mxu0  ;;  %v2788_v29 = vadd.f32 %v2787_v41, %v2759_v63 }
 0x213   : > { %v2760_v59 = vpop.f32.mrf.mxu2  ;;  %v2732_v24 = vadd.f32 %v5041_v22, %v2703_v43  ;;  %v2706_v22 = vadd.f32 %v5029_v20, %v2677_v14 }
 0x214   : > { %v2817_v3 = vadd.f32 %v2816_v61, %v2788_v29 }
 0x215   : > { %v2761_v32 = vadd.f32 %v2760_v59, %v2732_v24 }
 0x219   : > { %v2789_v2 = vpop.f32.mrf.mxu3 }
 0x21a   : > { %v5049_v26 = vpop.f32.mrf.mxu1  ;;  %v2818_v45 = vpop.f32.mrf.mxu0  ;;  %v2790_v21 = vadd.f32 %v2789_v2, %v2761_v32  ;;  %v2866_v32 = vld [vmem:[%s4309_s25 + $0x30] sm:$0xff] }
 0x21b   : > { %v2763_v42 = vpop.f32.mrf.mxu2  ;;  %v2735_v41 = vadd.f32 %v5049_v26, %v2706_v22 }
 0x21c   : > { %v2819_v19 = vadd.f32 %v2818_v45, %v2790_v21 }
 0x21d   : > { %v2764_v20 = vadd.f32 %v2763_v42, %v2735_v41  ;;  %v2867_v41 = vld [vmem:[%s4309_s25 + $0x38] sm:$0xff] }
 0x221   : > { %v2792_v1 = vpop.f32.mrf.mxu3 }
 0x222   : > { %v5058_v18 = vpop.f32.mrf.mxu1  ;;  %v2793_v26 = vadd.f32 %v2792_v1, %v2764_v20 }
 0x223   : > { %v2765_v40 = vpop.f32.mrf.mxu2 }
 0x22a   : > { %v5061_v39 = vpop.f32.mrf.mxu1 }
 0x22b   : > { %v2768_v63 = vpop.f32.mrf.mxu2 }
 0x232   : > { %v5064_v54 = vpop.f32.mrf.mxu1 }
 0x23a   : > { %v2840_v37 = vpop.f32.mrf.mxu1 }
 0x23b   : > { %v2841_v60 = vadd.f32 %v2840_v37, %v2812_v0  ;;  %v2821_v0 = vpop.f32.mrf.mxu0  ;;  %v2679_v37 = vadd.f32 %v5033_v16, %v2650_v6 }
 0x23c   : > { %v2822_v7 = vadd.f32 %v2821_v0, %v2793_v26 }
 0x23d   : > { %v2868_v56 = vadd.f32 %v2860_v49, %v2841_v60  ;;  %v2624_v60 = vadd.f32 %v5056_v48, %v5017_v4  ;;  %v2708_v10 = vadd.f32 %v5035_v44, %v2679_v37  ;;  %v2626_v44 = vadd.f32 %v5056_v48, %v5021_v36  ;;  %v2865_v48 = vld [vmem:[%s4309_s25 + $0x28] sm:$0xff] }
 0x23f   : > { %vm2876_vm8 = vcmp.gt.f32.partialorder %v2868_v56, 0.0  ;;  %v2884_v35 = vmul.f32 0.01, %v2868_v56  ;;  %v2653_v16 = vadd.f32 %v5037_v9, %v2624_v60  ;;  %v2737_v13 = vadd.f32 %v5058_v18, %v2708_v10 }
 0x240   : > { %v2655_v62 = vadd.f32 %v5045_v34, %v2626_v44 }
 0x241   : > { %v2892_v30 = vsel %vm2876_vm8, %v2868_v56, %v2884_v35  ;;  %v2794_v56 = vpop.f32.mrf.mxu3  ;;  %v2682_v35 = vadd.f32 %v5039_v12, %v2653_v16  ;;  %v2766_v2 = vadd.f32 %v2765_v40, %v2737_v13 }
 0x242   : > { %2900 = vst [vmem:[%s5075_s23] sm:$0xff] %v2892_v30  ;;  %v2842_v46 = vpop.f32.mrf.mxu1  ;;  %v2864_v30 = vld [vmem:[%s4309_s25 + $0x20] sm:$0xff]  ;;  %v2684_v29 = vadd.f32 %v5047_v25, %v2655_v62  ;;  %s4156_s25 = scalar_lea.hbm %s4155_s10, 64 }
 0x243   : > { %v2843_v50 = vadd.f32 %v2842_v46, %v2814_v38  ;;  %v2823_v38 = vpop.f32.mrf.mxu0  ;;  %v2711_v9 = vadd.f32 %v5043_v28, %v2682_v35  ;;  %v2795_v18 = vadd.f32 %v2794_v56, %v2766_v2  ;;  %p4157_p11 = scmp.ne.s32.totalorder %s4155_s10, %s4156_s25  ;;  %p4162_p1 = scmp.lt.s32.totalorder %s4160_s13, %s4156_s25 }
 0x244   : > { %v2713_v34 = vadd.f32 %v5051_v31, %v2684_v29 }
 0x245   : > { %v2869_v33 = vadd.f32 %v2861_v15, %v2843_v50  ;;  %v2740_v12 = vadd.f32 %v5061_v39, %v2711_v9  ;;  %p4158_p12 = pnand %p4157_p11, %p4275_p5  ;;  %p4163_p2 = por %p4162_p1, %p4161_p0 }
 0x246   : > { %v2742_v14 = vadd.f32 %v5064_v54, %v2713_v34 }
 0x247   : > { %vm2877_vm9 = vcmp.gt.f32.partialorder %v2869_v33, 0.0  ;;  %v2885_v27 = vmul.f32 0.01, %v2869_v33  ;;  %v2769_v28 = vadd.f32 %v2768_v63, %v2740_v12  ;;  %p4159_p13 = pneg %p4158_p12 }
 0x249   : > { %v2893_v11 = vsel %vm2877_vm9, %v2869_v33, %v2885_v27  ;;  %v2797_v43 = vpop.f32.mrf.mxu3  ;;  %v2824_v33 = vadd.f32 %v2823_v38, %v2795_v18  ;;  %p4164_p3 = pnand %p4163_p2, %p4159_p13 }
 0x24a   : > { %2901 = vst [vmem:[%s5075_s23 + $0x8] sm:$0xff] %v2893_v11  ;;  %v2845_v17 = vpop.f32.mrf.mxu1  ;;  %v2798_v27 = vadd.f32 %v2797_v43, %v2769_v28  ;;  %v2770_v11 = vpop.f32.mrf.mxu2 }
 0x24b   : > { %v2846_v23 = vadd.f32 %v2845_v17, %v2817_v3  ;;  %v2826_v24 = vpop.f32.mrf.mxu0  ;;  %v2771_v42 = vadd.f32 %v2770_v11, %v2742_v14 }
 0x24c   : > { %v2827_v25 = vadd.f32 %v2826_v24, %v2798_v27 }
 0x24d   : > { %v2870_v58 = vadd.f32 %v2862_v5, %v2846_v23 }
 0x24f   : > { %vm2878_vm10 = vcmp.gt.f32.partialorder %v2870_v58, 0.0  ;;  %v2886_v52 = vmul.f32 0.01, %v2870_v58 }
 0x251   : > { %v2894_v49 = vsel %vm2878_vm10, %v2870_v58, %v2886_v52  ;;  %v2799_v5 = vpop.f32.mrf.mxu3 }
 0x252   : > { %2902 = vst [vmem:[%s5075_s23 + $0x10] sm:$0xff] %v2894_v49  ;;  %v2847_v55 = vpop.f32.mrf.mxu1  ;;  %v2800_v31 = vadd.f32 %v2799_v5, %v2771_v42 }
 0x253   : > { %v2848_v61 = vadd.f32 %v2847_v55, %v2819_v19  ;;  %v2828_v22 = vpop.f32.mrf.mxu0 }
 0x254   : > { %v2829_v21 = vadd.f32 %v2828_v22, %v2800_v31 }
 0x255   : > { %v2871_v51 = vadd.f32 %v2863_v57, %v2848_v61 }
 0x257   : > { %vm2879_vm11 = vcmp.gt.f32.partialorder %v2871_v51, 0.0  ;;  %v2887_v8 = vmul.f32 0.01, %v2871_v51 }
 0x259   : > { %v2895_v4 = vsel %vm2879_vm11, %v2871_v51, %v2887_v8 }
 0x25a   : > { %2903 = vst [vmem:[%s5075_s23 + $0x18] sm:$0xff] %v2895_v4  ;;  %v2850_v59 = vpop.f32.mrf.mxu1 }
 0x25b   : > { %v2851_v46 = vadd.f32 %v2850_v59, %v2822_v7 }
 0x25d   : > { %v2872_v15 = vadd.f32 %v2864_v30, %v2851_v46 }
 0x25f   : > { %vm2880_vm12 = vcmp.gt.f32.partialorder %v2872_v15, 0.0  ;;  %v2888_v50 = vmul.f32 0.01, %v2872_v15 }
 0x261   : > { %v2896_v45 = vsel %vm2880_vm12, %v2872_v15, %v2888_v50 }
 0x262   : > { %2904 = vst [vmem:[%s5075_s23 + $0x20] sm:$0xff] %v2896_v45  ;;  %v2852_v36 = vpop.f32.mrf.mxu1 }
 0x263   : > { %v2853_v47 = vadd.f32 %v2852_v36, %v2824_v33 }
 0x265   : > { %v2873_v39 = vadd.f32 %v2865_v48, %v2853_v47 }
 0x267   : > { %vm2881_vm13 = vcmp.gt.f32.partialorder %v2873_v39, 0.0  ;;  %v2889_v3 = vmul.f32 0.01, %v2873_v39 }
 0x269   : > { %v2897_v17 = vsel %vm2881_vm13, %v2873_v39, %v2889_v3 }
 0x26a   : > { %2905 = vst [vmem:[%s5075_s23 + $0x28] sm:$0xff] %v2897_v17  ;;  %v2855_v53 = vpop.f32.mrf.mxu1 }
 0x26b   : > { %v2856_v23 = vadd.f32 %v2855_v53, %v2827_v25 }
 0x26d   : > { %v2874_v1 = vadd.f32 %v2866_v32, %v2856_v23 }
 0x26f   : > { %vm2882_vm14 = vcmp.gt.f32.partialorder %v2874_v1, 0.0  ;;  %v2890_v54 = vmul.f32 0.01, %v2874_v1 }
 0x271   : > { %v2898_v58 = vsel %vm2882_vm14, %v2874_v1, %v2890_v54 }
 0x272   : > { %2906 = vst [vmem:[%s5075_s23 + $0x30] sm:$0xff] %v2898_v58  ;;  %v2857_v6 = vpop.f32.mrf.mxu1 }
 0x273   : > { %v2858_v52 = vadd.f32 %v2857_v6, %v2829_v21 }
 0x275   : > { %v2875_v0 = vadd.f32 %v2867_v41, %v2858_v52 }
 0x277   : > { %vm2883_vm15 = vcmp.gt.f32.partialorder %v2875_v0, 0.0  ;;  %v2891_v37 = vmul.f32 0.01, %v2875_v0 }
 0x279   : > { %v2899_v19 = vsel %vm2883_vm15, %v2875_v0, %v2891_v37 }
 0x27a   : > { %2907 = vst [vmem:[%s5075_s23 + $0x38] sm:$0xff] %v2899_v19 }
 0x27b   : > { %4167 = shalt.err (!%p4164_p3)
}
 0x27c   : > { %s4205_s16 = smov 128   ;;  %s4206_s17 = smov 8  }
 0x27d   : > { %4096 = dma.vmem_to_hbm [thread:$0]  (%p4275_p5), %s2922_s8, 1024, %s2924_s9, %s2909_s22, %s4205_s16, %s4205_s16, %s4206_s17  }
 0x27e PF: > { %p4102_p4 = scmp.ge.s32.totalorder %s4202_s21, 2  ;;  %s2938_s23 = sand.u32 1, %s4190_s18  }
 0x27f   : > { %s2939_s26 = scalar_lea.sflag [#allocation5], %s2938_s23 }
 0x280   : > { %p4099_p7 = pnand %p4102_p4, %p4279_p6 }
 0x282   : > { %p4100_p8 = pneg %p4099_p7 }
 0x284   : > { %4185 = dma.done.wait (%p4100_p8), %s2939_s26, 1024  }
 0x285   : > { %4187 = vsyncadd (%p4100_p8), %s2939_s26, 4294966272  ;;  %p15_p9 = scmp.ge.s32.totalorder %s4262_s24, 6   ;;  %s5160_s18 = smov %s4194_s19 }
 0x286   : > { %s5161_s19 = smov %s4198_s20  ;;  %s5162_s20 = smov %s4273_s27 }
 0x287   : > { %s5163_s21 = smov %s4262_s24  ;;  %17 = sbr.rel (!%p15_p9) target bundleno = 3 (0x3), region = 78 }
 0x28c   :  { %2945 = vsyncpa [#allocation5], 1 }
 0x28d   :  { %2947 = vsyncpa [#allocation5 + $0x1], 1 }

</bundles_post_ra>
